<compile_context>
chip_gen: v7x
topology: tpu7x:2x2x1
jax: 0.10.0
libtpu: 0.0.40
codegen_flags: <defaults>
</compile_context>

<pallas_src>
import functools
import math

import jax
import jax.numpy as jnp
from jax import lax
from jax.experimental import pallas as pl
from jax.experimental.pallas import tpu as pltpu


COMPUTE_DTYPE = jnp.bfloat16          # MXU input dtype (weights + activation taps)


# ---------------------------------------------------------------------------
# Compiler params (generation-gated VMEM limit)
# ---------------------------------------------------------------------------

@functools.lru_cache(maxsize=None)
def _vmem_limit_bytes():
    try:
        cap = pltpu.get_tpu_info().vmem_capacity_bytes
    except Exception:
        cap = 64 * 1024 * 1024
    # half of physical VMEM, capped at 64 MiB: 64 MiB on v5e/v6e, 32 MiB on v7x.
    return int(min(64 * 1024 * 1024, max(cap // 2, 16 * 1024 * 1024)))


def _compiler_params():
    return pltpu.CompilerParams(dimension_semantics=("parallel",),
                                vmem_limit_bytes=_vmem_limit_bytes())


def _const_spec(*shape):
    """BlockSpec for grid-invariant weights/biases: full block, single-buffered."""
    return pl.BlockSpec(shape, lambda n, _r=len(shape): (0,) * _r,
                        pipeline_mode=pl.Buffered(1))


# ---------------------------------------------------------------------------
# Pallas kernels
# ---------------------------------------------------------------------------

def _shift_tap(x, row_iota, off, cdt):
    """x shifted along rows by `off` with zero padding, cast to compute dtype.

    Returned tap t satisfies t[i] = x[i + off] for in-range rows, 0 otherwise.
    Rolls are static-shift XLU rotations on the f32 value; masks are VPU selects.
    """
    L = x.shape[0]
    if off == 0:
        return x.astype(cdt)
    if off < 0:
        d = -off
        return jnp.where(row_iota >= d, pltpu.roll(x, d, 0), 0.0).astype(cdt)
    d = off
    return jnp.where(row_iota < L - d, pltpu.roll(x, L - d, 0), 0.0).astype(cdt)


def _conv1d_kernel(x_ref, w_ref, b_ref, o_ref, *, relu):
    """'Same' stride-1 Conv1d (+ optional ReLU) for one batch element, NLC layout.

    x_ref: (1, T, Cin) f32   w_ref: (K, Cin, Cout) bf16   b_ref: (1, Cout) f32
    o_ref: (1, T, Cout).  Taps formed in-register with roll + edge masks (no scratch).
    """
    K = w_ref.shape[0]
    pad = (K - 1) // 2
    T, Cin = x_ref.shape[1], x_ref.shape[2]
    cdt = w_ref.dtype

    x = x_ref[0]                                              # (T, Cin) f32, in vregs
    row = lax.broadcasted_iota(jnp.int32, (T, Cin), 0)
    w = w_ref[...]

    # Accumulator seeded from the center tap + bias.
    acc = jnp.dot(_shift_tap(x, row, 0, cdt), w[pad],
                  preferred_element_type=jnp.float32) + b_ref[...]
    for k in range(K):
        if k != pad:
            acc = acc + jnp.dot(_shift_tap(x, row, k - pad, cdt), w[k],
                                preferred_element_type=jnp.float32)
    if relu:
        acc = jnp.maximum(acc, 0.0)
    o_ref[0] = acc.astype(o_ref.dtype)


def _stage_kernel(xc_ref, wd_ref, bd_ref,
                  w1a_ref, b1a_ref, w2a_ref, b2a_ref,
                  w1b_ref, b1b_ref, w2b_ref, b2b_ref,
                  o_ref, *, dilations):
    """Fused encoder stage for one batch element, fully register/VMEM resident:

        strided down-conv (as 3-tap conv over stride-wide chunks)
          -> FCpermute -> depth x ResConv1DBlock (res1)
          -> FCpermute -> depth x ResConv1DBlock (res2)

    xc_ref: (1, L, stride*C) f32 chunked input   wd_ref: (3, stride*C, C) bf16
    res weights: (depth, 3, C, C)/(depth, C, C) bf16, biases (depth, 1, C) f32
    o_ref: (1, L, C) with L == C (permuted Resnet1D requirement).
    """
    cdt = wd_ref.dtype
    L, C = o_ref.shape[1], o_ref.shape[2]
    SC = xc_ref.shape[2]                                      # stride * C

    # ---- strided downsample as a 3-tap stride-1 conv over contiguous chunks ----
    xc = xc_ref[0]                                            # (L, SC) f32
    rowc = lax.broadcasted_iota(jnp.int32, (L, SC), 0)
    wd = wd_ref[...]
    acc = jnp.dot(_shift_tap(xc, rowc, 0, cdt), wd[1],
                  preferred_element_type=jnp.float32) + bd_ref[...]
    acc = acc + jnp.dot(_shift_tap(xc, rowc, -1, cdt), wd[0],
                        preferred_element_type=jnp.float32)
    acc = acc + jnp.dot(_shift_tap(xc, rowc, 1, cdt), wd[2],
                        preferred_element_type=jnp.float32)
    a = acc                                                   # (L, C) f32 residual chain

    # Per-dilation edge masks, hoisted out of the resblock loops (shape (L, C) = (L, L),
    # valid in both orientations since L == C).
    row = lax.broadcasted_iota(jnp.int32, (L, C), 0)
    masks = {dil: (row >= dil, row < L - dil) for dil in set(dilations)}

    def resblock(a, w1, b1, w2, b2, dil):
        # out = a + Conv1x1(ReLU(Conv3_dil(ReLU(a)))), taps via roll + mask (no scratch).
        h = jnp.maximum(a, 0.0)                               # f32, in vregs
        m_lo, m_hi = masks[dil]
        t_m = jnp.where(m_lo, pltpu.roll(h, dil, 0), 0.0).astype(cdt)      # h[i - dil]
        t_c = h.astype(cdt)
        t_p = jnp.where(m_hi, pltpu.roll(h, L - dil, 0), 0.0).astype(cdt)  # h[i + dil]
        acc = jnp.dot(t_c, w1[1], preferred_element_type=jnp.float32) + b1
        acc = acc + jnp.dot(t_m, w1[0], preferred_element_type=jnp.float32)
        acc = acc + jnp.dot(t_p, w1[2], preferred_element_type=jnp.float32)
        g = jnp.maximum(acc, 0.0).astype(cdt)
        return a + (jnp.dot(g, w2, preferred_element_type=jnp.float32) + b2)

    # FCpermute: in-register (XLU) transpose of the resident activation, then res1 stack.
    a = a.T
    for d, dil in enumerate(dilations):
        a = resblock(a, w1a_ref[d], b1a_ref[d], w2a_ref[d], b2a_ref[d], dil)
    # FCpermute back, then res2 stack.
    a = a.T
    for d, dil in enumerate(dilations):
        a = resblock(a, w1b_ref[d], b1b_ref[d], w2b_ref[d], b2b_ref[d], dil)

    o_ref[0] = a.astype(o_ref.dtype)


# ---------------------------------------------------------------------------
# Pallas wrappers
# ---------------------------------------------------------------------------

def conv1d_nlc(x_nlc, w, b, *, relu):
    """'Same' stride-1 Conv1d over NLC input; pad = (K-1)//2 (matches Conv1d(.., 3, 1, 1))."""
    N, T, Cin = x_nlc.shape
    K, _, Cout = w.shape
    assert K % 2 == 1
    kern = functools.partial(_conv1d_kernel, relu=relu)
    return pl.pallas_call(
        kern,
        grid=(N,),
        in_specs=[
            pl.BlockSpec((1, T, Cin), lambda n: (n, 0, 0)),
            _const_spec(K, Cin, Cout),
            _const_spec(1, Cout),
        ],
        out_specs=pl.BlockSpec((1, T, Cout), lambda n: (n, 0, 0)),
        out_shape=jax.ShapeDtypeStruct((N, T, Cout), x_nlc.dtype),
        compiler_params=_compiler_params(),
    )(x_nlc, w.astype(COMPUTE_DTYPE), b.reshape(1, Cout))


def _chunk_down_weights(wd, stride, pad):
    """Regroup (Kd, Cin, Cout) strided-conv weights into 3 chunk taps (stride*Cin, Cout).

    With x viewed as chunks C[m] = x[m*stride : (m+1)*stride], the strided conv becomes
    out[i] = sum_q C[i+q] @ Wq for q in {-1, 0, +1} (zero chunks outside the range).
    """
    Kd, Cin, Cout = wd.shape
    zero = jnp.zeros((Cin, Cout), wd.dtype)
    taps = []
    for q in (-1, 0, 1):
        rows = []
        for r in range(stride):
            k = q * stride + r + pad
            rows.append(wd[k] if 0 <= k < Kd else zero)
        taps.append(jnp.concatenate(rows, axis=0))            # (stride*Cin, Cout)
    return jnp.stack(taps)                                     # (3, stride*Cin, Cout)


def encoder_stage(x_nlc, down_wb, res1, res2, *, stride_t, depth, rate):
    N, T, C = x_nlc.shape
    wd, bd = down_wb
    Kd = wd.shape[0]                                           # = 2 * stride_t
    assert Kd == 2 * stride_t
    assert stride_t % 2 == 0 and T % stride_t == 0
    pad_t = stride_t // 2
    lout = T // stride_t
    assert lout == (T + 2 * pad_t - Kd) // stride_t + 1
    assert lout == C, "permuted Resnet1D requires downsampled length == width"
    dilations = tuple(rate ** d for d in range(depth))[::-1]   # reverse_dilation=True
    assert max(dilations) < lout

    wdq = _chunk_down_weights(wd, stride_t, pad_t).astype(COMPUTE_DTYPE)

    def stack(res):
        w1 = jnp.stack([p[0] for p in res]).astype(COMPUTE_DTYPE)     # (depth, 3, C, C)
        b1 = jnp.stack([p[1].reshape(1, C) for p in res])             # (depth, 1, C)
        w2 = jnp.stack([p[2][0] for p in res]).astype(COMPUTE_DTYPE)  # (depth, C, C)
        b2 = jnp.stack([p[3].reshape(1, C) for p in res])             # (depth, 1, C)
        return w1, b1, w2, b2

    w1a, b1a, w2a, b2a = stack(res1)
    w1b, b1b, w2b, b2b = stack(res2)

    # Free row-major view: (N, T, C) -> (N, lout, stride*C) contiguous chunks.
    xc = x_nlc.reshape(N, lout, stride_t * C)

    kern = functools.partial(_stage_kernel, dilations=dilations)
    return pl.pallas_call(
        kern,
        grid=(N,),
        in_specs=[
            pl.BlockSpec((1, lout, stride_t * C), lambda n: (n, 0, 0)),
            _const_spec(3, stride_t * C, C), _const_spec(1, C),
            _const_spec(depth, 3, C, C), _const_spec(depth, 1, C),
            _const_spec(depth, C, C), _const_spec(depth, 1, C),
            _const_spec(depth, 3, C, C), _const_spec(depth, 1, C),
            _const_spec(depth, C, C), _const_spec(depth, 1, C),
        ],
        out_specs=pl.BlockSpec((1, lout, C), lambda n: (n, 0, 0)),
        out_shape=jax.ShapeDtypeStruct((N, lout, C), x_nlc.dtype),
        compiler_params=_compiler_params(),
    )(xc, wdq, bd.reshape(1, C), w1a, b1a, w2a, b2a, w1b, b1b, w2b, b2b)


def spatial_conv_encoder(params, x_ncl, *, down_t, stride_t, depth, dilation_growth_rate):
    """Forward pass.  x_ncl: (N, input_emb_width, T) -> (N, output_emb_width, T_out)."""
    x = jnp.swapaxes(x_ncl, 1, 2)                     # NCL -> NLC (channels on lanes)
    w, b = params["conv_in"]
    x = conv1d_nlc(x, w, b, relu=True)
    for i in range(down_t):
        blk = params["blocks"][i]
        x = encoder_stage(x, blk["down"], blk["res1"], blk["res2"],
                          stride_t=stride_t, depth=depth, rate=dilation_growth_rate)
    w, b = params["conv_out"]
    x = conv1d_nlc(x, w, b, relu=False)
    return jnp.swapaxes(x, 1, 2)                      # NLC -> NCL


# ---------------------------------------------------------------------------
# Deterministic parameter init (PyTorch Conv1d-style uniform bounds)
# ---------------------------------------------------------------------------

def _conv_params(key, K, cin, cout):
    kw, kb = jax.random.split(key)
    bound = 1.0 / math.sqrt(cin * K)
    w = jax.random.uniform(kw, (K, cin, cout), jnp.float32, -bound, bound)
    b = jax.random.uniform(kb, (cout,), jnp.float32, -bound, bound)
    return w, b


def _resnet_params(key, width, depth):
    keys = jax.random.split(key, depth)
    blocks = []
    for k in keys:
        k1, k2 = jax.random.split(k)
        w1, b1 = _conv_params(k1, 3, width, width)    # dilated 3-tap conv
        w2, b2 = _conv_params(k2, 1, width, width)    # 1x1 conv
        blocks.append((w1, b1, w2, b2))
    return blocks


def init_params(key, input_emb_width, output_emb_width, down_t, stride_t, width, depth):
    filter_t = stride_t * 2
    keys = jax.random.split(key, 2 + down_t)
    params = {"conv_in": _conv_params(keys[0], 3, input_emb_width, width), "blocks": []}
    for i in range(down_t):
        kd, kr1, kr2 = jax.random.split(keys[1 + i], 3)
        params["blocks"].append({
            "down": _conv_params(kd, filter_t, width, width),
            "res1": _resnet_params(kr1, width, depth),
            "res2": _resnet_params(kr2, width, depth),
        })
    params["conv_out"] = _conv_params(keys[-1], 3, width, output_emb_width)
    return params


# ---------------------------------------------------------------------------
# Pure-JAX (XLA, fp32) reference mirroring the PyTorch NCL computation
# ---------------------------------------------------------------------------

def _ref_conv1d(x_ncl, w_kio, b, stride, pad, dilation):
    w_oik = jnp.transpose(w_kio, (2, 1, 0))           # (Cout, Cin, K)
    y = lax.conv_general_dilated(
        x_ncl, w_oik, window_strides=(stride,), padding=[(pad, pad)],
        rhs_dilation=(dilation,), dimension_numbers=("NCH", "OIH", "NCH"),
        precision=lax.Precision.HIGHEST)
    return y + b[None, :, None]


def _ref_resnet(x, res_params, depth, rate):
    dilations = [rate ** d for d in range(depth)][::-1]
    for (w1, b1, w2, b2), dil in zip(res_params, dilations):
        h = jax.nn.relu(x)
        h = _ref_conv1d(h, w1, b1, 1, dil, dil)
        h = jax.nn.relu(h)
        h = _ref_conv1d(h, w2, b2, 1, 0, 1)
        x = x + h
    return x


def ref_forward(params, x, *, down_t, stride_t, depth, rate):
    pad_t = stride_t // 2
    x = jax.nn.relu(_ref_conv1d(x, *params["conv_in"], 1, 1, 1))
    for i in range(down_t):
        blk = params["blocks"][i]
        x = _ref_conv1d(x, *blk["down"], stride_t, pad_t, 1)
        x = jnp.transpose(x, (0, 2, 1))               # FCpermute
        x = _ref_resnet(x, blk["res1"], depth, rate)
        x = jnp.transpose(x, (0, 2, 1))               # FCpermute
        x = _ref_resnet(x, blk["res2"], depth, rate)
    return _ref_conv1d(x, *params["conv_out"], 1, 1, 1)


# ---------------------------------------------------------------------------

if __name__ == "__main__":
    # Small, self-consistent hyper-parameters.  The permuted Resnet1D requires the
    # down-sampled sequence length to equal `width`: down_t=1, width=16, T=32.
    N, input_emb_width, T = 2, 4, 32
    width, output_emb_width = 16, 8
    down_t, stride_t, depth, dilation_growth_rate = 1, 2, 2, 3

    key = jax.random.PRNGKey(0)
    kx, kp = jax.random.split(key)
    x = jax.random.normal(kx, (N, input_emb_width, T), jnp.float32)
    params = init_params(kp, input_emb_width, output_emb_width,
                         down_t, stride_t, width, depth)

    fwd = jax.jit(functools.partial(
        spatial_conv_encoder, down_t=down_t, stride_t=stride_t,
        depth=depth, dilation_growth_rate=dilation_growth_rate))
    out = jax.block_until_ready(fwd(params, x))

    ref = ref_forward(params, x, down_t=down_t, stride_t=stride_t,
                      depth=depth, rate=dilation_growth_rate)

    assert out.shape == (N, output_emb_width, T // (stride_t ** down_t)), out.shape
    # bf16 MXU inputs vs fp32 XLA reference -> loosened tolerance.
    max_err = float(jnp.max(jnp.abs(out - ref)))
    assert jnp.allclose(out, ref, atol=2e-2, rtol=2e-2), max_err
    print("KERNEL_OK")
</pallas_src>

<mosaic_0001>
module attributes {stable_mosaic.version = 11 : i64} {
  func.func @_conv1d_kernel(%arg0: i32, %arg1: memref<1x32x4xf32, #tpu.memory_space<vmem>>, %arg2: memref<3x4x16xbf16, #tpu.memory_space<vmem>>, %arg3: memref<1x16xf32, #tpu.memory_space<vmem>>, %arg4: memref<1x32x16xf32, #tpu.memory_space<vmem>>) attributes {dimension_semantics = [#tpu.dimension_semantics<parallel>], iteration_bounds = array<i64: 2>, scalar_prefetch = 0 : i64, scratch_operands = 0 : i64, tpu.core_type = #tpu.core_type<tc>, window_params = [{transform_indices = @transform_0, window_bounds = array<i64: 1, 32, 4>}, {pipeline_mode = #tpu.pipeline_mode<synchronous>, transform_indices = @transform_1, window_bounds = array<i64: 3, 4, 16>}, {pipeline_mode = #tpu.pipeline_mode<synchronous>, transform_indices = @transform_2, window_bounds = array<i64: 1, 16>}, {transform_indices = @transform_3, window_bounds = array<i64: 1, 32, 16>}]} {
    %c0 = arith.constant 0 : index
    %c0_0 = arith.constant 0 : index
    %c0_1 = arith.constant 0 : index
    %0 = vector.load %arg1[%c0, %c0_0, %c0_1] : memref<1x32x4xf32, #tpu.memory_space<vmem>>, vector<1x32x4xf32>
    %1 = vector.shape_cast %0 : vector<1x32x4xf32> to vector<32x4xf32>
    %2 = tpu.iota {dimensions = array<i32: 0>} : vector<32x4xi32>
    %c0_2 = arith.constant 0 : index
    %c0_3 = arith.constant 0 : index
    %c0_4 = arith.constant 0 : index
    %3 = vector.load %arg2[%c0_2, %c0_3, %c0_4] : memref<3x4x16xbf16, #tpu.memory_space<vmem>>, vector<3x4x16xbf16>
    %4 = arith.truncf %1 : vector<32x4xf32> to vector<32x4xbf16>
    %5 = vector.extract_strided_slice %3 {offsets = [1, 0, 0], sizes = [1, 4, 16], strides = [1, 1, 1]} : vector<3x4x16xbf16> to vector<1x4x16xbf16>
    %6 = vector.shape_cast %5 : vector<1x4x16xbf16> to vector<4x16xbf16>
    %cst = arith.constant dense<0.000000e+00> : vector<32x16xf32>
    %7 = tpu.matmul %4, %6, %cst {dimension_numbers = #tpu.dot_dimension_numbers<[1], [0], [0], [1], [0, 0, 1, 1], [], []>} : vector<32x4xbf16>, vector<4x16xbf16>, vector<32x16xf32> -> vector<32x16xf32>
    %c0_5 = arith.constant 0 : index
    %c0_6 = arith.constant 0 : index
    %8 = vector.load %arg3[%c0_5, %c0_6] : memref<1x16xf32, #tpu.memory_space<vmem>>, vector<1x16xf32>
    %9 = vector.broadcast %8 : vector<1x16xf32> to vector<32x16xf32>
    %10 = arith.addf %7, %9 : vector<32x16xf32>
    %c1_i32 = arith.constant 1 : i32
    %11 = vector.broadcast %c1_i32 : i32 to vector<32x4xi32>
    %12 = arith.cmpi sge, %2, %11 : vector<32x4xi32>
    %c1_i32_7 = arith.constant 1 : i32
    %13 = tpu.dynamic_rotate %1 by %c1_i32_7 dim 0 : vector<32x4xf32>, i32 -> vector<32x4xf32>
    %cst_8 = arith.constant 0.000000e+00 : f32
    %14 = vector.broadcast %cst_8 : f32 to vector<32x4xf32>
    %15 = arith.select %12, %13, %14 : vector<32x4xi1>, vector<32x4xf32>
    %16 = arith.truncf %15 : vector<32x4xf32> to vector<32x4xbf16>
    %17 = vector.extract_strided_slice %3 {offsets = [0, 0, 0], sizes = [1, 4, 16], strides = [1, 1, 1]} : vector<3x4x16xbf16> to vector<1x4x16xbf16>
    %18 = vector.shape_cast %17 : vector<1x4x16xbf16> to vector<4x16xbf16>
    %cst_9 = arith.constant dense<0.000000e+00> : vector<32x16xf32>
    %19 = tpu.matmul %16, %18, %cst_9 {dimension_numbers = #tpu.dot_dimension_numbers<[1], [0], [0], [1], [0, 0, 1, 1], [], []>} : vector<32x4xbf16>, vector<4x16xbf16>, vector<32x16xf32> -> vector<32x16xf32>
    %20 = arith.addf %10, %19 : vector<32x16xf32>
    %c31_i32 = arith.constant 31 : i32
    %21 = vector.broadcast %c31_i32 : i32 to vector<32x4xi32>
    %22 = arith.cmpi slt, %2, %21 : vector<32x4xi32>
    %c31_i32_10 = arith.constant 31 : i32
    %23 = tpu.dynamic_rotate %1 by %c31_i32_10 dim 0 : vector<32x4xf32>, i32 -> vector<32x4xf32>
    %cst_11 = arith.constant 0.000000e+00 : f32
    %24 = vector.broadcast %cst_11 : f32 to vector<32x4xf32>
    %25 = arith.select %22, %23, %24 : vector<32x4xi1>, vector<32x4xf32>
    %26 = arith.truncf %25 : vector<32x4xf32> to vector<32x4xbf16>
    %27 = vector.extract_strided_slice %3 {offsets = [2, 0, 0], sizes = [1, 4, 16], strides = [1, 1, 1]} : vector<3x4x16xbf16> to vector<1x4x16xbf16>
    %28 = vector.shape_cast %27 : vector<1x4x16xbf16> to vector<4x16xbf16>
    %cst_12 = arith.constant dense<0.000000e+00> : vector<32x16xf32>
    %29 = tpu.matmul %26, %28, %cst_12 {dimension_numbers = #tpu.dot_dimension_numbers<[1], [0], [0], [1], [0, 0, 1, 1], [], []>} : vector<32x4xbf16>, vector<4x16xbf16>, vector<32x16xf32> -> vector<32x16xf32>
    %30 = arith.addf %20, %29 : vector<32x16xf32>
    %cst_13 = arith.constant 0.000000e+00 : f32
    %31 = vector.broadcast %cst_13 : f32 to vector<32x16xf32>
    %32 = arith.maximumf %30, %31 : vector<32x16xf32>
    %c0_14 = arith.constant 0 : index
    %c0_15 = arith.constant 0 : index
    %c0_16 = arith.constant 0 : index
    %33 = vector.load %arg4[%c0_14, %c0_15, %c0_16] : memref<1x32x16xf32, #tpu.memory_space<vmem>>, vector<1x32x16xf32>
    %34 = vector.shape_cast %33 : vector<1x32x16xf32> to vector<32x16xf32>
    %35 = vector.shape_cast %32 : vector<32x16xf32> to vector<1x32x16xf32>
    tpu.vector_store %arg4[%c0_14, %c0_15, %c0_16], %35 {strides = array<i32>} : memref<1x32x16xf32, #tpu.memory_space<vmem>>, vector<1x32x16xf32>,
    return
  }
  func.func @transform_0(%arg0: i32) -> (i32, i32, i32) {
    %c0_i32 = arith.constant 0 : i32
    %c0_i32_0 = arith.constant 0 : i32
    %c0_i32_1 = arith.constant 0 : i32
    return %arg0, %c0_i32, %c0_i32_0 : i32, i32, i32
  }
  func.func @transform_1(%arg0: i32) -> (i32, i32, i32) {
    %c0_i32 = arith.constant 0 : i32
    %c0_i32_0 = arith.constant 0 : i32
    %c0_i32_1 = arith.constant 0 : i32
    %c0_i32_2 = arith.constant 0 : i32
    return %c0_i32, %c0_i32_0, %c0_i32_1 : i32, i32, i32
  }
  func.func @transform_2(%arg0: i32) -> (i32, i32) {
    %c0_i32 = arith.constant 0 : i32
    %c0_i32_0 = arith.constant 0 : i32
    %c0_i32_1 = arith.constant 0 : i32
    return %c0_i32, %c0_i32_0 : i32, i32
  }
  func.func @transform_3(%arg0: i32) -> (i32, i32, i32) {
    %c0_i32 = arith.constant 0 : i32
    %c0_i32_0 = arith.constant 0 : i32
    %c0_i32_1 = arith.constant 0 : i32
    return %arg0, %c0_i32, %c0_i32_0 : i32, i32, i32
  }
}

module attributes {stable_mosaic.version = 11 : i64} {
  func.func @_conv1d_kernel(%arg0: i32, %arg1: memref<1x16x16xf32, #tpu.memory_space<vmem>>, %arg2: memref<3x16x8xbf16, #tpu.memory_space<vmem>>, %arg3: memref<1x8xf32, #tpu.memory_space<vmem>>, %arg4: memref<1x16x8xf32, #tpu.memory_space<vmem>>) attributes {dimension_semantics = [#tpu.dimension_semantics<parallel>], iteration_bounds = array<i64: 2>, scalar_prefetch = 0 : i64, scratch_operands = 0 : i64, tpu.core_type = #tpu.core_type<tc>, window_params = [{transform_indices = @transform_0, window_bounds = array<i64: 1, 16, 16>}, {pipeline_mode = #tpu.pipeline_mode<synchronous>, transform_indices = @transform_1, window_bounds = array<i64: 3, 16, 8>}, {pipeline_mode = #tpu.pipeline_mode<synchronous>, transform_indices = @transform_2, window_bounds = array<i64: 1, 8>}, {transform_indices = @transform_3, window_bounds = array<i64: 1, 16, 8>}]} {
    %c0 = arith.constant 0 : index
    %c0_0 = arith.constant 0 : index
    %c0_1 = arith.constant 0 : index
    %0 = vector.load %arg1[%c0, %c0_0, %c0_1] : memref<1x16x16xf32, #tpu.memory_space<vmem>>, vector<1x16x16xf32>
    %1 = vector.shape_cast %0 : vector<1x16x16xf32> to vector<16x16xf32>
    %2 = tpu.iota {dimensions = array<i32: 0>} : vector<16x16xi32>
    %c0_2 = arith.constant 0 : index
    %c0_3 = arith.constant 0 : index
    %c0_4 = arith.constant 0 : index
    %3 = vector.load %arg2[%c0_2, %c0_3, %c0_4] : memref<3x16x8xbf16, #tpu.memory_space<vmem>>, vector<3x16x8xbf16>
    %4 = arith.truncf %1 : vector<16x16xf32> to vector<16x16xbf16>
    %5 = vector.extract_strided_slice %3 {offsets = [1, 0, 0], sizes = [1, 16, 8], strides = [1, 1, 1]} : vector<3x16x8xbf16> to vector<1x16x8xbf16>
    %6 = vector.shape_cast %5 : vector<1x16x8xbf16> to vector<16x8xbf16>
    %cst = arith.constant dense<0.000000e+00> : vector<16x8xf32>
    %7 = tpu.matmul %4, %6, %cst {dimension_numbers = #tpu.dot_dimension_numbers<[1], [0], [0], [1], [0, 0, 1, 1], [], []>} : vector<16x16xbf16>, vector<16x8xbf16>, vector<16x8xf32> -> vector<16x8xf32>
    %c0_5 = arith.constant 0 : index
    %c0_6 = arith.constant 0 : index
    %8 = vector.load %arg3[%c0_5, %c0_6] : memref<1x8xf32, #tpu.memory_space<vmem>>, vector<1x8xf32>
    %9 = vector.broadcast %8 : vector<1x8xf32> to vector<16x8xf32>
    %10 = arith.addf %7, %9 : vector<16x8xf32>
    %c1_i32 = arith.constant 1 : i32
    %11 = vector.broadcast %c1_i32 : i32 to vector<16x16xi32>
    %12 = arith.cmpi sge, %2, %11 : vector<16x16xi32>
    %c1_i32_7 = arith.constant 1 : i32
    %13 = tpu.dynamic_rotate %1 by %c1_i32_7 dim 0 : vector<16x16xf32>, i32 -> vector<16x16xf32>
    %cst_8 = arith.constant 0.000000e+00 : f32
    %14 = vector.broadcast %cst_8 : f32 to vector<16x16xf32>
    %15 = arith.select %12, %13, %14 : vector<16x16xi1>, vector<16x16xf32>
    %16 = arith.truncf %15 : vector<16x16xf32> to vector<16x16xbf16>
    %17 = vector.extract_strided_slice %3 {offsets = [0, 0, 0], sizes = [1, 16, 8], strides = [1, 1, 1]} : vector<3x16x8xbf16> to vector<1x16x8xbf16>
    %18 = vector.shape_cast %17 : vector<1x16x8xbf16> to vector<16x8xbf16>
    %cst_9 = arith.constant dense<0.000000e+00> : vector<16x8xf32>
    %19 = tpu.matmul %16, %18, %cst_9 {dimension_numbers = #tpu.dot_dimension_numbers<[1], [0], [0], [1], [0, 0, 1, 1], [], []>} : vector<16x16xbf16>, vector<16x8xbf16>, vector<16x8xf32> -> vector<16x8xf32>
    %20 = arith.addf %10, %19 : vector<16x8xf32>
    %c15_i32 = arith.constant 15 : i32
    %21 = vector.broadcast %c15_i32 : i32 to vector<16x16xi32>
    %22 = arith.cmpi slt, %2, %21 : vector<16x16xi32>
    %c15_i32_10 = arith.constant 15 : i32
    %23 = tpu.dynamic_rotate %1 by %c15_i32_10 dim 0 : vector<16x16xf32>, i32 -> vector<16x16xf32>
    %cst_11 = arith.constant 0.000000e+00 : f32
    %24 = vector.broadcast %cst_11 : f32 to vector<16x16xf32>
    %25 = arith.select %22, %23, %24 : vector<16x16xi1>, vector<16x16xf32>
    %26 = arith.truncf %25 : vector<16x16xf32> to vector<16x16xbf16>
    %27 = vector.extract_strided_slice %3 {offsets = [2, 0, 0], sizes = [1, 16, 8], strides = [1, 1, 1]} : vector<3x16x8xbf16> to vector<1x16x8xbf16>
    %28 = vector.shape_cast %27 : vector<1x16x8xbf16> to vector<16x8xbf16>
    %cst_12 = arith.constant dense<0.000000e+00> : vector<16x8xf32>
    %29 = tpu.matmul %26, %28, %cst_12 {dimension_numbers = #tpu.dot_dimension_numbers<[1], [0], [0], [1], [0, 0, 1, 1], [], []>} : vector<16x16xbf16>, vector<16x8xbf16>, vector<16x8xf32> -> vector<16x8xf32>
    %30 = arith.addf %20, %29 : vector<16x8xf32>
    %c0_13 = arith.constant 0 : index
    %c0_14 = arith.constant 0 : index
    %c0_15 = arith.constant 0 : index
    %31 = vector.load %arg4[%c0_13, %c0_14, %c0_15] : memref<1x16x8xf32, #tpu.memory_space<vmem>>, vector<1x16x8xf32>
    %32 = vector.shape_cast %31 : vector<1x16x8xf32> to vector<16x8xf32>
    %33 = vector.shape_cast %30 : vector<16x8xf32> to vector<1x16x8xf32>
    tpu.vector_store %arg4[%c0_13, %c0_14, %c0_15], %33 {strides = array<i32>} : memref<1x16x8xf32, #tpu.memory_space<vmem>>, vector<1x16x8xf32>,
    return
  }
  func.func @transform_0(%arg0: i32) -> (i32, i32, i32) {
    %c0_i32 = arith.constant 0 : i32
    %c0_i32_0 = arith.constant 0 : i32
    %c0_i32_1 = arith.constant 0 : i32
    return %arg0, %c0_i32, %c0_i32_0 : i32, i32, i32
  }
  func.func @transform_1(%arg0: i32) -> (i32, i32, i32) {
    %c0_i32 = arith.constant 0 : i32
    %c0_i32_0 = arith.constant 0 : i32
    %c0_i32_1 = arith.constant 0 : i32
    %c0_i32_2 = arith.constant 0 : i32
    return %c0_i32, %c0_i32_0, %c0_i32_1 : i32, i32, i32
  }
  func.func @transform_2(%arg0: i32) -> (i32, i32) {
    %c0_i32 = arith.constant 0 : i32
    %c0_i32_0 = arith.constant 0 : i32
    %c0_i32_1 = arith.constant 0 : i32
    return %c0_i32, %c0_i32_0 : i32, i32
  }
  func.func @transform_3(%arg0: i32) -> (i32, i32, i32) {
    %c0_i32 = arith.constant 0 : i32
    %c0_i32_0 = arith.constant 0 : i32
    %c0_i32_1 = arith.constant 0 : i32
    return %arg0, %c0_i32, %c0_i32_0 : i32, i32, i32
  }
}

module attributes {stable_mosaic.version = 11 : i64} {
  func.func @_stage_kernel(%arg0: i32, %arg1: memref<1x16x32xf32, #tpu.memory_space<vmem>>, %arg2: memref<3x32x16xbf16, #tpu.memory_space<vmem>>, %arg3: memref<1x16xf32, #tpu.memory_space<vmem>>, %arg4: memref<2x3x16x16xbf16, #tpu.memory_space<vmem>>, %arg5: memref<2x1x16xf32, #tpu.memory_space<vmem>>, %arg6: memref<2x16x16xbf16, #tpu.memory_space<vmem>>, %arg7: memref<2x1x16xf32, #tpu.memory_space<vmem>>, %arg8: memref<2x3x16x16xbf16, #tpu.memory_space<vmem>>, %arg9: memref<2x1x16xf32, #tpu.memory_space<vmem>>, %arg10: memref<2x16x16xbf16, #tpu.memory_space<vmem>>, %arg11: memref<2x1x16xf32, #tpu.memory_space<vmem>>, %arg12: memref<1x16x16xf32, #tpu.memory_space<vmem>>) attributes {dimension_semantics = [#tpu.dimension_semantics<parallel>], iteration_bounds = array<i64: 2>, scalar_prefetch = 0 : i64, scratch_operands = 0 : i64, tpu.core_type = #tpu.core_type<tc>, window_params = [{transform_indices = @transform_0, window_bounds = array<i64: 1, 16, 32>}, {pipeline_mode = #tpu.pipeline_mode<synchronous>, transform_indices = @transform_1, window_bounds = array<i64: 3, 32, 16>}, {pipeline_mode = #tpu.pipeline_mode<synchronous>, transform_indices = @transform_2, window_bounds = array<i64: 1, 16>}, {pipeline_mode = #tpu.pipeline_mode<synchronous>, transform_indices = @transform_3, window_bounds = array<i64: 2, 3, 16, 16>}, {pipeline_mode = #tpu.pipeline_mode<synchronous>, transform_indices = @transform_4, window_bounds = array<i64: 2, 1, 16>}, {pipeline_mode = #tpu.pipeline_mode<synchronous>, transform_indices = @transform_5, window_bounds = array<i64: 2, 16, 16>}, {pipeline_mode = #tpu.pipeline_mode<synchronous>, transform_indices = @transform_6, window_bounds = array<i64: 2, 1, 16>}, {pipeline_mode = #tpu.pipeline_mode<synchronous>, transform_indices = @transform_7, window_bounds = array<i64: 2, 3, 16, 16>}, {pipeline_mode = #tpu.pipeline_mode<synchronous>, transform_indices = @transform_8, window_bounds = array<i64: 2, 1, 16>}, {pipeline_mode = #tpu.pipeline_mode<synchronous>, transform_indices = @transform_9, window_bounds = array<i64: 2, 16, 16>}, {pipeline_mode = #tpu.pipeline_mode<synchronous>, transform_indices = @transform_10, window_bounds = array<i64: 2, 1, 16>}, {transform_indices = @transform_11, window_bounds = array<i64: 1, 16, 16>}]} {
    %c0 = arith.constant 0 : index
    %c0_0 = arith.constant 0 : index
    %c0_1 = arith.constant 0 : index
    %0 = vector.load %arg1[%c0, %c0_0, %c0_1] : memref<1x16x32xf32, #tpu.memory_space<vmem>>, vector<1x16x32xf32>
    %1 = vector.shape_cast %0 : vector<1x16x32xf32> to vector<16x32xf32>
    %2 = tpu.iota {dimensions = array<i32: 0>} : vector<16x32xi32>
    %c0_2 = arith.constant 0 : index
    %c0_3 = arith.constant 0 : index
    %c0_4 = arith.constant 0 : index
    %3 = vector.load %arg2[%c0_2, %c0_3, %c0_4] : memref<3x32x16xbf16, #tpu.memory_space<vmem>>, vector<3x32x16xbf16>
    %4 = arith.truncf %1 : vector<16x32xf32> to vector<16x32xbf16>
    %5 = vector.extract_strided_slice %3 {offsets = [1, 0, 0], sizes = [1, 32, 16], strides = [1, 1, 1]} : vector<3x32x16xbf16> to vector<1x32x16xbf16>
    %6 = vector.shape_cast %5 : vector<1x32x16xbf16> to vector<32x16xbf16>
    %cst = arith.constant dense<0.000000e+00> : vector<16x16xf32>
    %7 = tpu.matmul %4, %6, %cst {dimension_numbers = #tpu.dot_dimension_numbers<[1], [0], [0], [1], [0, 0, 1, 1], [], []>} : vector<16x32xbf16>, vector<32x16xbf16>, vector<16x16xf32> -> vector<16x16xf32>
    %c0_5 = arith.constant 0 : index
    %c0_6 = arith.constant 0 : index
    %8 = vector.load %arg3[%c0_5, %c0_6] : memref<1x16xf32, #tpu.memory_space<vmem>>, vector<1x16xf32>
    %9 = vector.broadcast %8 : vector<1x16xf32> to vector<16x16xf32>
    %10 = arith.addf %7, %9 : vector<16x16xf32>
    %c1_i32 = arith.constant 1 : i32
    %11 = vector.broadcast %c1_i32 : i32 to vector<16x32xi32>
    %12 = arith.cmpi sge, %2, %11 : vector<16x32xi32>
    %c1_i32_7 = arith.constant 1 : i32
    %13 = tpu.dynamic_rotate %1 by %c1_i32_7 dim 0 : vector<16x32xf32>, i32 -> vector<16x32xf32>
    %cst_8 = arith.constant 0.000000e+00 : f32
    %14 = vector.broadcast %cst_8 : f32 to vector<16x32xf32>
    %15 = arith.select %12, %13, %14 : vector<16x32xi1>, vector<16x32xf32>
    %16 = arith.truncf %15 : vector<16x32xf32> to vector<16x32xbf16>
    %17 = vector.extract_strided_slice %3 {offsets = [0, 0, 0], sizes = [1, 32, 16], strides = [1, 1, 1]} : vector<3x32x16xbf16> to vector<1x32x16xbf16>
    %18 = vector.shape_cast %17 : vector<1x32x16xbf16> to vector<32x16xbf16>
    %cst_9 = arith.constant dense<0.000000e+00> : vector<16x16xf32>
    %19 = tpu.matmul %16, %18, %cst_9 {dimension_numbers = #tpu.dot_dimension_numbers<[1], [0], [0], [1], [0, 0, 1, 1], [], []>} : vector<16x32xbf16>, vector<32x16xbf16>, vector<16x16xf32> -> vector<16x16xf32>
    %20 = arith.addf %10, %19 : vector<16x16xf32>
    %c15_i32 = arith.constant 15 : i32
    %21 = vector.broadcast %c15_i32 : i32 to vector<16x32xi32>
    %22 = arith.cmpi slt, %2, %21 : vector<16x32xi32>
    %c15_i32_10 = arith.constant 15 : i32
    %23 = tpu.dynamic_rotate %1 by %c15_i32_10 dim 0 : vector<16x32xf32>, i32 -> vector<16x32xf32>
    %cst_11 = arith.constant 0.000000e+00 : f32
    %24 = vector.broadcast %cst_11 : f32 to vector<16x32xf32>
    %25 = arith.select %22, %23, %24 : vector<16x32xi1>, vector<16x32xf32>
    %26 = arith.truncf %25 : vector<16x32xf32> to vector<16x32xbf16>
    %27 = vector.extract_strided_slice %3 {offsets = [2, 0, 0], sizes = [1, 32, 16], strides = [1, 1, 1]} : vector<3x32x16xbf16> to vector<1x32x16xbf16>
    %28 = vector.shape_cast %27 : vector<1x32x16xbf16> to vector<32x16xbf16>
    %cst_12 = arith.constant dense<0.000000e+00> : vector<16x16xf32>
    %29 = tpu.matmul %26, %28, %cst_12 {dimension_numbers = #tpu.dot_dimension_numbers<[1], [0], [0], [1], [0, 0, 1, 1], [], []>} : vector<16x32xbf16>, vector<32x16xbf16>, vector<16x16xf32> -> vector<16x16xf32>
    %30 = arith.addf %20, %29 : vector<16x16xf32>
    %31 = tpu.iota {dimensions = array<i32: 0>} : vector<16x16xi32>
    %c1_i32_13 = arith.constant 1 : i32
    %32 = vector.broadcast %c1_i32_13 : i32 to vector<16x16xi32>
    %33 = arith.cmpi sge, %31, %32 : vector<16x16xi32>
    %c15_i32_14 = arith.constant 15 : i32
    %34 = vector.broadcast %c15_i32_14 : i32 to vector<16x16xi32>
    %35 = arith.cmpi slt, %31, %34 : vector<16x16xi32>
    %c3_i32 = arith.constant 3 : i32
    %36 = vector.broadcast %c3_i32 : i32 to vector<16x16xi32>
    %37 = arith.cmpi sge, %31, %36 : vector<16x16xi32>
    %c13_i32 = arith.constant 13 : i32
    %38 = vector.broadcast %c13_i32 : i32 to vector<16x16xi32>
    %39 = arith.cmpi slt, %31, %38 : vector<16x16xi32>
    %40 = tpu.transpose %30, [1, 0] : vector<16x16xf32> -> vector<16x16xf32>
    %c0_15 = arith.constant 0 : index
    %c0_16 = arith.constant 0 : index
    %c0_17 = arith.constant 0 : index
    %c0_18 = arith.constant 0 : index
    %41 = vector.load %arg4[%c0_15, %c0_16, %c0_17, %c0_18] : memref<2x3x16x16xbf16, #tpu.memory_space<vmem>>, vector<1x3x16x16xbf16>
    %42 = vector.shape_cast %41 : vector<1x3x16x16xbf16> to vector<3x16x16xbf16>
    %c0_19 = arith.constant 0 : index
    %c0_20 = arith.constant 0 : index
    %c0_21 = arith.constant 0 : index
    %43 = vector.load %arg5[%c0_19, %c0_20, %c0_21] : memref<2x1x16xf32, #tpu.memory_space<vmem>>, vector<1x1x16xf32>
    %44 = vector.shape_cast %43 : vector<1x1x16xf32> to vector<1x16xf32>
    %c0_22 = arith.constant 0 : index
    %c0_23 = arith.constant 0 : index
    %c0_24 = arith.constant 0 : index
    %45 = vector.load %arg6[%c0_22, %c0_23, %c0_24] : memref<2x16x16xbf16, #tpu.memory_space<vmem>>, vector<1x16x16xbf16>
    %46 = vector.shape_cast %45 : vector<1x16x16xbf16> to vector<16x16xbf16>
    %c0_25 = arith.constant 0 : index
    %c0_26 = arith.constant 0 : index
    %c0_27 = arith.constant 0 : index
    %47 = vector.load %arg7[%c0_25, %c0_26, %c0_27] : memref<2x1x16xf32, #tpu.memory_space<vmem>>, vector<1x1x16xf32>
    %48 = vector.shape_cast %47 : vector<1x1x16xf32> to vector<1x16xf32>
    %cst_28 = arith.constant 0.000000e+00 : f32
    %49 = vector.broadcast %cst_28 : f32 to vector<16x16xf32>
    %50 = arith.maximumf %40, %49 : vector<16x16xf32>
    %c3_i32_29 = arith.constant 3 : i32
    %51 = tpu.dynamic_rotate %50 by %c3_i32_29 dim 0 : vector<16x16xf32>, i32 -> vector<16x16xf32>
    %cst_30 = arith.constant 0.000000e+00 : f32
    %52 = vector.broadcast %cst_30 : f32 to vector<16x16xf32>
    %53 = arith.select %37, %51, %52 : vector<16x16xi1>, vector<16x16xf32>
    %54 = arith.truncf %53 : vector<16x16xf32> to vector<16x16xbf16>
    %55 = arith.truncf %50 : vector<16x16xf32> to vector<16x16xbf16>
    %c13_i32_31 = arith.constant 13 : i32
    %56 = tpu.dynamic_rotate %50 by %c13_i32_31 dim 0 : vector<16x16xf32>, i32 -> vector<16x16xf32>
    %cst_32 = arith.constant 0.000000e+00 : f32
    %57 = vector.broadcast %cst_32 : f32 to vector<16x16xf32>
    %58 = arith.select %39, %56, %57 : vector<16x16xi1>, vector<16x16xf32>
    %59 = arith.truncf %58 : vector<16x16xf32> to vector<16x16xbf16>
    %60 = vector.extract_strided_slice %42 {offsets = [1, 0, 0], sizes = [1, 16, 16], strides = [1, 1, 1]} : vector<3x16x16xbf16> to vector<1x16x16xbf16>
    %61 = vector.shape_cast %60 : vector<1x16x16xbf16> to vector<16x16xbf16>
    %cst_33 = arith.constant dense<0.000000e+00> : vector<16x16xf32>
    %62 = tpu.matmul %55, %61, %cst_33 {dimension_numbers = #tpu.dot_dimension_numbers<[1], [0], [0], [1], [0, 0, 1, 1], [], []>} : vector<16x16xbf16>, vector<16x16xbf16>, vector<16x16xf32> -> vector<16x16xf32>
    %63 = vector.broadcast %44 : vector<1x16xf32> to vector<16x16xf32>
    %64 = arith.addf %62, %63 : vector<16x16xf32>
    %65 = vector.extract_strided_slice %42 {offsets = [0, 0, 0], sizes = [1, 16, 16], strides = [1, 1, 1]} : vector<3x16x16xbf16> to vector<1x16x16xbf16>
    %66 = vector.shape_cast %65 : vector<1x16x16xbf16> to vector<16x16xbf16>
    %cst_34 = arith.constant dense<0.000000e+00> : vector<16x16xf32>
    %67 = tpu.matmul %54, %66, %cst_34 {dimension_numbers = #tpu.dot_dimension_numbers<[1], [0], [0], [1], [0, 0, 1, 1], [], []>} : vector<16x16xbf16>, vector<16x16xbf16>, vector<16x16xf32> -> vector<16x16xf32>
    %68 = arith.addf %64, %67 : vector<16x16xf32>
    %69 = vector.extract_strided_slice %42 {offsets = [2, 0, 0], sizes = [1, 16, 16], strides = [1, 1, 1]} : vector<3x16x16xbf16> to vector<1x16x16xbf16>
    %70 = vector.shape_cast %69 : vector<1x16x16xbf16> to vector<16x16xbf16>
    %cst_35 = arith.constant dense<0.000000e+00> : vector<16x16xf32>
    %71 = tpu.matmul %59, %70, %cst_35 {dimension_numbers = #tpu.dot_dimension_numbers<[1], [0], [0], [1], [0, 0, 1, 1], [], []>} : vector<16x16xbf16>, vector<16x16xbf16>, vector<16x16xf32> -> vector<16x16xf32>
    %72 = arith.addf %68, %71 : vector<16x16xf32>
    %cst_36 = arith.constant 0.000000e+00 : f32
    %73 = vector.broadcast %cst_36 : f32 to vector<16x16xf32>
    %74 = arith.maximumf %72, %73 : vector<16x16xf32>
    %75 = arith.truncf %74 : vector<16x16xf32> to vector<16x16xbf16>
    %cst_37 = arith.constant dense<0.000000e+00> : vector<16x16xf32>
    %76 = tpu.matmul %75, %46, %cst_37 {dimension_numbers = #tpu.dot_dimension_numbers<[1], [0], [0], [1], [0, 0, 1, 1], [], []>} : vector<16x16xbf16>, vector<16x16xbf16>, vector<16x16xf32> -> vector<16x16xf32>
    %77 = vector.broadcast %48 : vector<1x16xf32> to vector<16x16xf32>
    %78 = arith.addf %76, %77 : vector<16x16xf32>
    %79 = arith.addf %40, %78 : vector<16x16xf32>
    %c1 = arith.constant 1 : index
    %c0_38 = arith.constant 0 : index
    %c0_39 = arith.constant 0 : index
    %c0_40 = arith.constant 0 : index
    %80 = vector.load %arg4[%c1, %c0_38, %c0_39, %c0_40] : memref<2x3x16x16xbf16, #tpu.memory_space<vmem>>, vector<1x3x16x16xbf16>
    %81 = vector.shape_cast %80 : vector<1x3x16x16xbf16> to vector<3x16x16xbf16>
    %c1_41 = arith.constant 1 : index
    %c0_42 = arith.constant 0 : index
    %c0_43 = arith.constant 0 : index
    %82 = vector.load %arg5[%c1_41, %c0_42, %c0_43] : memref<2x1x16xf32, #tpu.memory_space<vmem>>, vector<1x1x16xf32>
    %83 = vector.shape_cast %82 : vector<1x1x16xf32> to vector<1x16xf32>
    %c1_44 = arith.constant 1 : index
    %c0_45 = arith.constant 0 : index
    %c0_46 = arith.constant 0 : index
    %84 = vector.load %arg6[%c1_44, %c0_45, %c0_46] : memref<2x16x16xbf16, #tpu.memory_space<vmem>>, vector<1x16x16xbf16>
    %85 = vector.shape_cast %84 : vector<1x16x16xbf16> to vector<16x16xbf16>
    %c1_47 = arith.constant 1 : index
    %c0_48 = arith.constant 0 : index
    %c0_49 = arith.constant 0 : index
    %86 = vector.load %arg7[%c1_47, %c0_48, %c0_49] : memref<2x1x16xf32, #tpu.memory_space<vmem>>, vector<1x1x16xf32>
    %87 = vector.shape_cast %86 : vector<1x1x16xf32> to vector<1x16xf32>
    %cst_50 = arith.constant 0.000000e+00 : f32
    %88 = vector.broadcast %cst_50 : f32 to vector<16x16xf32>
    %89 = arith.maximumf %79, %88 : vector<16x16xf32>
    %c1_i32_51 = arith.constant 1 : i32
    %90 = tpu.dynamic_rotate %89 by %c1_i32_51 dim 0 : vector<16x16xf32>, i32 -> vector<16x16xf32>
    %cst_52 = arith.constant 0.000000e+00 : f32
    %91 = vector.broadcast %cst_52 : f32 to vector<16x16xf32>
    %92 = arith.select %33, %90, %91 : vector<16x16xi1>, vector<16x16xf32>
    %93 = arith.truncf %92 : vector<16x16xf32> to vector<16x16xbf16>
    %94 = arith.truncf %89 : vector<16x16xf32> to vector<16x16xbf16>
    %c15_i32_53 = arith.constant 15 : i32
    %95 = tpu.dynamic_rotate %89 by %c15_i32_53 dim 0 : vector<16x16xf32>, i32 -> vector<16x16xf32>
    %cst_54 = arith.constant 0.000000e+00 : f32
    %96 = vector.broadcast %cst_54 : f32 to vector<16x16xf32>
    %97 = arith.select %35, %95, %96 : vector<16x16xi1>, vector<16x16xf32>
    %98 = arith.truncf %97 : vector<16x16xf32> to vector<16x16xbf16>
    %99 = vector.extract_strided_slice %81 {offsets = [1, 0, 0], sizes = [1, 16, 16], strides = [1, 1, 1]} : vector<3x16x16xbf16> to vector<1x16x16xbf16>
    %100 = vector.shape_cast %99 : vector<1x16x16xbf16> to vector<16x16xbf16>
    %cst_55 = arith.constant dense<0.000000e+00> : vector<16x16xf32>
    %101 = tpu.matmul %94, %100, %cst_55 {dimension_numbers = #tpu.dot_dimension_numbers<[1], [0], [0], [1], [0, 0, 1, 1], [], []>} : vector<16x16xbf16>, vector<16x16xbf16>, vector<16x16xf32> -> vector<16x16xf32>
    %102 = vector.broadcast %83 : vector<1x16xf32> to vector<16x16xf32>
    %103 = arith.addf %101, %102 : vector<16x16xf32>
    %104 = vector.extract_strided_slice %81 {offsets = [0, 0, 0], sizes = [1, 16, 16], strides = [1, 1, 1]} : vector<3x16x16xbf16> to vector<1x16x16xbf16>
    %105 = vector.shape_cast %104 : vector<1x16x16xbf16> to vector<16x16xbf16>
    %cst_56 = arith.constant dense<0.000000e+00> : vector<16x16xf32>
    %106 = tpu.matmul %93, %105, %cst_56 {dimension_numbers = #tpu.dot_dimension_numbers<[1], [0], [0], [1], [0, 0, 1, 1], [], []>} : vector<16x16xbf16>, vector<16x16xbf16>, vector<16x16xf32> -> vector<16x16xf32>
    %107 = arith.addf %103, %106 : vector<16x16xf32>
    %108 = vector.extract_strided_slice %81 {offsets = [2, 0, 0], sizes = [1, 16, 16], strides = [1, 1, 1]} : vector<3x16x16xbf16> to vector<1x16x16xbf16>
    %109 = vector.shape_cast %108 : vector<1x16x16xbf16> to vector<16x16xbf16>
    %cst_57 = arith.constant dense<0.000000e+00> : vector<16x16xf32>
    %110 = tpu.matmul %98, %109, %cst_57 {dimension_numbers = #tpu.dot_dimension_numbers<[1], [0], [0], [1], [0, 0, 1, 1], [], []>} : vector<16x16xbf16>, vector<16x16xbf16>, vector<16x16xf32> -> vector<16x16xf32>
    %111 = arith.addf %107, %110 : vector<16x16xf32>
    %cst_58 = arith.constant 0.000000e+00 : f32
    %112 = vector.broadcast %cst_58 : f32 to vector<16x16xf32>
    %113 = arith.maximumf %111, %112 : vector<16x16xf32>
    %114 = arith.truncf %113 : vector<16x16xf32> to vector<16x16xbf16>
    %cst_59 = arith.constant dense<0.000000e+00> : vector<16x16xf32>
    %115 = tpu.matmul %114, %85, %cst_59 {dimension_numbers = #tpu.dot_dimension_numbers<[1], [0], [0], [1], [0, 0, 1, 1], [], []>} : vector<16x16xbf16>, vector<16x16xbf16>, vector<16x16xf32> -> vector<16x16xf32>
    %116 = vector.broadcast %87 : vector<1x16xf32> to vector<16x16xf32>
    %117 = arith.addf %115, %116 : vector<16x16xf32>
    %118 = arith.addf %79, %117 : vector<16x16xf32>
    %119 = tpu.transpose %118, [1, 0] : vector<16x16xf32> -> vector<16x16xf32>
    %c0_60 = arith.constant 0 : index
    %c0_61 = arith.constant 0 : index
    %c0_62 = arith.constant 0 : index
    %c0_63 = arith.constant 0 : index
    %120 = vector.load %arg8[%c0_60, %c0_61, %c0_62, %c0_63] : memref<2x3x16x16xbf16, #tpu.memory_space<vmem>>, vector<1x3x16x16xbf16>
    %121 = vector.shape_cast %120 : vector<1x3x16x16xbf16> to vector<3x16x16xbf16>
    %c0_64 = arith.constant 0 : index
    %c0_65 = arith.constant 0 : index
    %c0_66 = arith.constant 0 : index
    %122 = vector.load %arg9[%c0_64, %c0_65, %c0_66] : memref<2x1x16xf32, #tpu.memory_space<vmem>>, vector<1x1x16xf32>
    %123 = vector.shape_cast %122 : vector<1x1x16xf32> to vector<1x16xf32>
    %c0_67 = arith.constant 0 : index
    %c0_68 = arith.constant 0 : index
    %c0_69 = arith.constant 0 : index
    %124 = vector.load %arg10[%c0_67, %c0_68, %c0_69] : memref<2x16x16xbf16, #tpu.memory_space<vmem>>, vector<1x16x16xbf16>
    %125 = vector.shape_cast %124 : vector<1x16x16xbf16> to vector<16x16xbf16>
    %c0_70 = arith.constant 0 : index
    %c0_71 = arith.constant 0 : index
    %c0_72 = arith.constant 0 : index
    %126 = vector.load %arg11[%c0_70, %c0_71, %c0_72] : memref<2x1x16xf32, #tpu.memory_space<vmem>>, vector<1x1x16xf32>
    %127 = vector.shape_cast %126 : vector<1x1x16xf32> to vector<1x16xf32>
    %cst_73 = arith.constant 0.000000e+00 : f32
    %128 = vector.broadcast %cst_73 : f32 to vector<16x16xf32>
    %129 = arith.maximumf %119, %128 : vector<16x16xf32>
    %c3_i32_74 = arith.constant 3 : i32
    %130 = tpu.dynamic_rotate %129 by %c3_i32_74 dim 0 : vector<16x16xf32>, i32 -> vector<16x16xf32>
    %cst_75 = arith.constant 0.000000e+00 : f32
    %131 = vector.broadcast %cst_75 : f32 to vector<16x16xf32>
    %132 = arith.select %37, %130, %131 : vector<16x16xi1>, vector<16x16xf32>
    %133 = arith.truncf %132 : vector<16x16xf32> to vector<16x16xbf16>
    %134 = arith.truncf %129 : vector<16x16xf32> to vector<16x16xbf16>
    %c13_i32_76 = arith.constant 13 : i32
    %135 = tpu.dynamic_rotate %129 by %c13_i32_76 dim 0 : vector<16x16xf32>, i32 -> vector<16x16xf32>
    %cst_77 = arith.constant 0.000000e+00 : f32
    %136 = vector.broadcast %cst_77 : f32 to vector<16x16xf32>
    %137 = arith.select %39, %135, %136 : vector<16x16xi1>, vector<16x16xf32>
    %138 = arith.truncf %137 : vector<16x16xf32> to vector<16x16xbf16>
    %139 = vector.extract_strided_slice %121 {offsets = [1, 0, 0], sizes = [1, 16, 16], strides = [1, 1, 1]} : vector<3x16x16xbf16> to vector<1x16x16xbf16>
    %140 = vector.shape_cast %139 : vector<1x16x16xbf16> to vector<16x16xbf16>
    %cst_78 = arith.constant dense<0.000000e+00> : vector<16x16xf32>
    %141 = tpu.matmul %134, %140, %cst_78 {dimension_numbers = #tpu.dot_dimension_numbers<[1], [0], [0], [1], [0, 0, 1, 1], [], []>} : vector<16x16xbf16>, vector<16x16xbf16>, vector<16x16xf32> -> vector<16x16xf32>
    %142 = vector.broadcast %123 : vector<1x16xf32> to vector<16x16xf32>
    %143 = arith.addf %141, %142 : vector<16x16xf32>
    %144 = vector.extract_strided_slice %121 {offsets = [0, 0, 0], sizes = [1, 16, 16], strides = [1, 1, 1]} : vector<3x16x16xbf16> to vector<1x16x16xbf16>
    %145 = vector.shape_cast %144 : vector<1x16x16xbf16> to vector<16x16xbf16>
    %cst_79 = arith.constant dense<0.000000e+00> : vector<16x16xf32>
    %146 = tpu.matmul %133, %145, %cst_79 {dimension_numbers = #tpu.dot_dimension_numbers<[1], [0], [0], [1], [0, 0, 1, 1], [], []>} : vector<16x16xbf16>, vector<16x16xbf16>, vector<16x16xf32> -> vector<16x16xf32>
    %147 = arith.addf %143, %146 : vector<16x16xf32>
    %148 = vector.extract_strided_slice %121 {offsets = [2, 0, 0], sizes = [1, 16, 16], strides = [1, 1, 1]} : vector<3x16x16xbf16> to vector<1x16x16xbf16>
    %149 = vector.shape_cast %148 : vector<1x16x16xbf16> to vector<16x16xbf16>
    %cst_80 = arith.constant dense<0.000000e+00> : vector<16x16xf32>
    %150 = tpu.matmul %138, %149, %cst_80 {dimension_numbers = #tpu.dot_dimension_numbers<[1], [0], [0], [1], [0, 0, 1, 1], [], []>} : vector<16x16xbf16>, vector<16x16xbf16>, vector<16x16xf32> -> vector<16x16xf32>
    %151 = arith.addf %147, %150 : vector<16x16xf32>
    %cst_81 = arith.constant 0.000000e+00 : f32
    %152 = vector.broadcast %cst_81 : f32 to vector<16x16xf32>
    %153 = arith.maximumf %151, %152 : vector<16x16xf32>
    %154 = arith.truncf %153 : vector<16x16xf32> to vector<16x16xbf16>
    %cst_82 = arith.constant dense<0.000000e+00> : vector<16x16xf32>
    %155 = tpu.matmul %154, %125, %cst_82 {dimension_numbers = #tpu.dot_dimension_numbers<[1], [0], [0], [1], [0, 0, 1, 1], [], []>} : vector<16x16xbf16>, vector<16x16xbf16>, vector<16x16xf32> -> vector<16x16xf32>
    %156 = vector.broadcast %127 : vector<1x16xf32> to vector<16x16xf32>
    %157 = arith.addf %155, %156 : vector<16x16xf32>
    %158 = arith.addf %119, %157 : vector<16x16xf32>
    %c1_83 = arith.constant 1 : index
    %c0_84 = arith.constant 0 : index
    %c0_85 = arith.constant 0 : index
    %c0_86 = arith.constant 0 : index
    %159 = vector.load %arg8[%c1_83, %c0_84, %c0_85, %c0_86] : memref<2x3x16x16xbf16, #tpu.memory_space<vmem>>, vector<1x3x16x16xbf16>
    %160 = vector.shape_cast %159 : vector<1x3x16x16xbf16> to vector<3x16x16xbf16>
    %c1_87 = arith.constant 1 : index
    %c0_88 = arith.constant 0 : index
    %c0_89 = arith.constant 0 : index
    %161 = vector.load %arg9[%c1_87, %c0_88, %c0_89] : memref<2x1x16xf32, #tpu.memory_space<vmem>>, vector<1x1x16xf32>
    %162 = vector.shape_cast %161 : vector<1x1x16xf32> to vector<1x16xf32>
    %c1_90 = arith.constant 1 : index
    %c0_91 = arith.constant 0 : index
    %c0_92 = arith.constant 0 : index
    %163 = vector.load %arg10[%c1_90, %c0_91, %c0_92] : memref<2x16x16xbf16, #tpu.memory_space<vmem>>, vector<1x16x16xbf16>
    %164 = vector.shape_cast %163 : vector<1x16x16xbf16> to vector<16x16xbf16>
    %c1_93 = arith.constant 1 : index
    %c0_94 = arith.constant 0 : index
    %c0_95 = arith.constant 0 : index
    %165 = vector.load %arg11[%c1_93, %c0_94, %c0_95] : memref<2x1x16xf32, #tpu.memory_space<vmem>>, vector<1x1x16xf32>
    %166 = vector.shape_cast %165 : vector<1x1x16xf32> to vector<1x16xf32>
    %cst_96 = arith.constant 0.000000e+00 : f32
    %167 = vector.broadcast %cst_96 : f32 to vector<16x16xf32>
    %168 = arith.maximumf %158, %167 : vector<16x16xf32>
    %c1_i32_97 = arith.constant 1 : i32
    %169 = tpu.dynamic_rotate %168 by %c1_i32_97 dim 0 : vector<16x16xf32>, i32 -> vector<16x16xf32>
    %cst_98 = arith.constant 0.000000e+00 : f32
    %170 = vector.broadcast %cst_98 : f32 to vector<16x16xf32>
    %171 = arith.select %33, %169, %170 : vector<16x16xi1>, vector<16x16xf32>
    %172 = arith.truncf %171 : vector<16x16xf32> to vector<16x16xbf16>
    %173 = arith.truncf %168 : vector<16x16xf32> to vector<16x16xbf16>
    %c15_i32_99 = arith.constant 15 : i32
    %174 = tpu.dynamic_rotate %168 by %c15_i32_99 dim 0 : vector<16x16xf32>, i32 -> vector<16x16xf32>
    %cst_100 = arith.constant 0.000000e+00 : f32
    %175 = vector.broadcast %cst_100 : f32 to vector<16x16xf32>
    %176 = arith.select %35, %174, %175 : vector<16x16xi1>, vector<16x16xf32>
    %177 = arith.truncf %176 : vector<16x16xf32> to vector<16x16xbf16>
    %178 = vector.extract_strided_slice %160 {offsets = [1, 0, 0], sizes = [1, 16, 16], strides = [1, 1, 1]} : vector<3x16x16xbf16> to vector<1x16x16xbf16>
    %179 = vector.shape_cast %178 : vector<1x16x16xbf16> to vector<16x16xbf16>
    %cst_101 = arith.constant dense<0.000000e+00> : vector<16x16xf32>
    %180 = tpu.matmul %173, %179, %cst_101 {dimension_numbers = #tpu.dot_dimension_numbers<[1], [0], [0], [1], [0, 0, 1, 1], [], []>} : vector<16x16xbf16>, vector<16x16xbf16>, vector<16x16xf32> -> vector<16x16xf32>
    %181 = vector.broadcast %162 : vector<1x16xf32> to vector<16x16xf32>
    %182 = arith.addf %180, %181 : vector<16x16xf32>
    %183 = vector.extract_strided_slice %160 {offsets = [0, 0, 0], sizes = [1, 16, 16], strides = [1, 1, 1]} : vector<3x16x16xbf16> to vector<1x16x16xbf16>
    %184 = vector.shape_cast %183 : vector<1x16x16xbf16> to vector<16x16xbf16>
    %cst_102 = arith.constant dense<0.000000e+00> : vector<16x16xf32>
    %185 = tpu.matmul %172, %184, %cst_102 {dimension_numbers = #tpu.dot_dimension_numbers<[1], [0], [0], [1], [0, 0, 1, 1], [], []>} : vector<16x16xbf16>, vector<16x16xbf16>, vector<16x16xf32> -> vector<16x16xf32>
    %186 = arith.addf %182, %185 : vector<16x16xf32>
    %187 = vector.extract_strided_slice %160 {offsets = [2, 0, 0], sizes = [1, 16, 16], strides = [1, 1, 1]} : vector<3x16x16xbf16> to vector<1x16x16xbf16>
    %188 = vector.shape_cast %187 : vector<1x16x16xbf16> to vector<16x16xbf16>
    %cst_103 = arith.constant dense<0.000000e+00> : vector<16x16xf32>
    %189 = tpu.matmul %177, %188, %cst_103 {dimension_numbers = #tpu.dot_dimension_numbers<[1], [0], [0], [1], [0, 0, 1, 1], [], []>} : vector<16x16xbf16>, vector<16x16xbf16>, vector<16x16xf32> -> vector<16x16xf32>
    %190 = arith.addf %186, %189 : vector<16x16xf32>
    %cst_104 = arith.constant 0.000000e+00 : f32
    %191 = vector.broadcast %cst_104 : f32 to vector<16x16xf32>
    %192 = arith.maximumf %190, %191 : vector<16x16xf32>
    %193 = arith.truncf %192 : vector<16x16xf32> to vector<16x16xbf16>
    %cst_105 = arith.constant dense<0.000000e+00> : vector<16x16xf32>
    %194 = tpu.matmul %193, %164, %cst_105 {dimension_numbers = #tpu.dot_dimension_numbers<[1], [0], [0], [1], [0, 0, 1, 1], [], []>} : vector<16x16xbf16>, vector<16x16xbf16>, vector<16x16xf32> -> vector<16x16xf32>
    %195 = vector.broadcast %166 : vector<1x16xf32> to vector<16x16xf32>
    %196 = arith.addf %194, %195 : vector<16x16xf32>
    %197 = arith.addf %158, %196 : vector<16x16xf32>
    %c0_106 = arith.constant 0 : index
    %c0_107 = arith.constant 0 : index
    %c0_108 = arith.constant 0 : index
    %198 = vector.load %arg12[%c0_106, %c0_107, %c0_108] : memref<1x16x16xf32, #tpu.memory_space<vmem>>, vector<1x16x16xf32>
    %199 = vector.shape_cast %198 : vector<1x16x16xf32> to vector<16x16xf32>
    %200 = vector.shape_cast %197 : vector<16x16xf32> to vector<1x16x16xf32>
    tpu.vector_store %arg12[%c0_106, %c0_107, %c0_108], %200 {strides = array<i32>} : memref<1x16x16xf32, #tpu.memory_space<vmem>>, vector<1x16x16xf32>,
    return
  }
  func.func @transform_0(%arg0: i32) -> (i32, i32, i32) {
    %c0_i32 = arith.constant 0 : i32
    %c0_i32_0 = arith.constant 0 : i32
    %c0_i32_1 = arith.constant 0 : i32
    return %arg0, %c0_i32, %c0_i32_0 : i32, i32, i32
  }
  func.func @transform_1(%arg0: i32) -> (i32, i32, i32) {
    %c0_i32 = arith.constant 0 : i32
    %c0_i32_0 = arith.constant 0 : i32
    %c0_i32_1 = arith.constant 0 : i32
    %c0_i32_2 = arith.constant 0 : i32
    return %c0_i32, %c0_i32_0, %c0_i32_1 : i32, i32, i32
  }
  func.func @transform_2(%arg0: i32) -> (i32, i32) {
    %c0_i32 = arith.constant 0 : i32
    %c0_i32_0 = arith.constant 0 : i32
    %c0_i32_1 = arith.constant 0 : i32
    return %c0_i32, %c0_i32_0 : i32, i32
  }
  func.func @transform_3(%arg0: i32) -> (i32, i32, i32, i32) {
    %c0_i32 = arith.constant 0 : i32
    %c0_i32_0 = arith.constant 0 : i32
    %c0_i32_1 = arith.constant 0 : i32
    %c0_i32_2 = arith.constant 0 : i32
    %c0_i32_3 = arith.constant 0 : i32
    return %c0_i32, %c0_i32_0, %c0_i32_1, %c0_i32_2 : i32, i32, i32, i32
  }
  func.func @transform_4(%arg0: i32) -> (i32, i32, i32) {
    %c0_i32 = arith.constant 0 : i32
    %c0_i32_0 = arith.constant 0 : i32
    %c0_i32_1 = arith.constant 0 : i32
    %c0_i32_2 = arith.constant 0 : i32
    return %c0_i32, %c0_i32_0, %c0_i32_1 : i32, i32, i32
  }
  func.func @transform_5(%arg0: i32) -> (i32, i32, i32) {
    %c0_i32 = arith.constant 0 : i32
    %c0_i32_0 = arith.constant 0 : i32
    %c0_i32_1 = arith.constant 0 : i32
    %c0_i32_2 = arith.constant 0 : i32
    return %c0_i32, %c0_i32_0, %c0_i32_1 : i32, i32, i32
  }
  func.func @transform_6(%arg0: i32) -> (i32, i32, i32) {
    %c0_i32 = arith.constant 0 : i32
    %c0_i32_0 = arith.constant 0 : i32
    %c0_i32_1 = arith.constant 0 : i32
    %c0_i32_2 = arith.constant 0 : i32
    return %c0_i32, %c0_i32_0, %c0_i32_1 : i32, i32, i32
  }
  func.func @transform_7(%arg0: i32) -> (i32, i32, i32, i32) {
    %c0_i32 = arith.constant 0 : i32
    %c0_i32_0 = arith.constant 0 : i32
    %c0_i32_1 = arith.constant 0 : i32
    %c0_i32_2 = arith.constant 0 : i32
    %c0_i32_3 = arith.constant 0 : i32
    return %c0_i32, %c0_i32_0, %c0_i32_1, %c0_i32_2 : i32, i32, i32, i32
  }
  func.func @transform_8(%arg0: i32) -> (i32, i32, i32) {
    %c0_i32 = arith.constant 0 : i32
    %c0_i32_0 = arith.constant 0 : i32
    %c0_i32_1 = arith.constant 0 : i32
    %c0_i32_2 = arith.constant 0 : i32
    return %c0_i32, %c0_i32_0, %c0_i32_1 : i32, i32, i32
  }
  func.func @transform_9(%arg0: i32) -> (i32, i32, i32) {
    %c0_i32 = arith.constant 0 : i32
    %c0_i32_0 = arith.constant 0 : i32
    %c0_i32_1 = arith.constant 0 : i32
    %c0_i32_2 = arith.constant 0 : i32
    return %c0_i32, %c0_i32_0, %c0_i32_1 : i32, i32, i32
  }
  func.func @transform_10(%arg0: i32) -> (i32, i32, i32) {
    %c0_i32 = arith.constant 0 : i32
    %c0_i32_0 = arith.constant 0 : i32
    %c0_i32_1 = arith.constant 0 : i32
    %c0_i32_2 = arith.constant 0 : i32
    return %c0_i32, %c0_i32_0, %c0_i32_1 : i32, i32, i32
  }
  func.func @transform_11(%arg0: i32) -> (i32, i32, i32) {
    %c0_i32 = arith.constant 0 : i32
    %c0_i32_0 = arith.constant 0 : i32
    %c0_i32_1 = arith.constant 0 : i32
    return %arg0, %c0_i32, %c0_i32_0 : i32, i32, i32
  }
}

</mosaic_0001>

<bundles_post_ra>
// kernel: spatial_conv_encoder.3
= control target key start
LH: loop header
LB: loop body
LE: loop exit
PB: predicated region body
PF: predicated region fallthrough
CT: control target
= control target key end

     0   :  { %s577_s12 = smov 0   ;;  %s634_s0 = inlined_call_operand.vmem [shape: f32[2,32,4], index: 0, kind: input, shape index: {}]   ;;  %s635_s1 = inlined_call_operand.vmem [shape: bf16[3,4,16], index: 1, kind: input, shape index: {}]   ;;  %s636_s2 = inlined_call_operand.vmem [shape: f32[1,16], index: 2, kind: input, shape index: {}]   ;;  %s637_s3 = inlined_call_operand.vmem [shape: f32[2,32,16], index: 3, kind: output, shape index: {}]  }
   0x1 LB: > { %s479_s13 = sadd.s32 4294967295, %s555_s12   ;;  %p483_p0 = scmp.ge.s32.totalorder %s555_s12, 1  ;;  %s555_s12 = sphi %s577_s12, %s13_s12  }
   0x2   : > { %p137_p1 = scmp.lt.s32.totalorder %s555_s12, 3 }
   0x4   : > { %p138_p2 = pnand %p483_p0, %p137_p1 }
   0x5   : > { %v181_v0 = vld [vmem:[%s635_s1] sm:$0x3] (!%p138_p2)  ;;  %vm200_vm0 = vcmask (!%p138_p2), 1041408   ;;  %p161_p3 = scmp.lt.s32.totalorder (!%p138_p2), %s479_s13, 1  ;;  %v176_v1 = vlaneseq (!%p138_p2)  ;;  %v183_v3 = vld [vmem:[%s635_s1 + $0x4] sm:$0x3] (!%p138_p2) }
   0x6   : > { %141 = sbr.rel (%p138_p2) target bundleno = 256 (0x100), region = 32  ;;  %539 = vmatprep.subr.msk.bf16.mxu0 (!%p138_p2), %vm200_vm0, %v181_v0  ;;  %v279_v2 = vsel (!%p138_p2), %vm200_vm0, %v181_v0, 0  ;;  %v182_v4 = vld [vmem:[%s635_s1 + $0x2] sm:$0x3] (!%p138_p2)  ;;  %vm193_vm4 = vcmask (!%p138_p2), 31744   ;;  %v360_v30 = vsel (!%p138_p2), %vm200_vm0, %v183_v3, 0 }
   0x7   : > { %515 = vmatpush3.bf16.msra.mxu0 (!%p138_p2), %v279_v2  ;;  %v177_v5 = vshrl.u32 (!%p138_p2), %v176_v1, 7  ;;  %538 = vmatprep.subr.msk.bf16.mxu1 (!%p138_p2), %vm200_vm0, %v182_v4  ;;  %v202_v6 = vsel (!%p138_p2), %vm200_vm0, %v182_v4, 0  ;;  %v488_v41 = vld [vmem:[%s636_s2] ss:$0 sm:$0xff] (!%p138_p2)  ;;  %vm419_vm6 = vcmask (!%p138_p2), 130048  }
   0x8   : > { %540 = vmatprep.subr.msk.bf16.mxu0 (!%p138_p2), %vm200_vm0, %v183_v3  ;;  %509 = vmatpush3.bf16.msra.mxu1 (!%p138_p2), %v202_v6 }
   0x9   : > { %vm253_vm1 = vcmp.ge.s32.totalorder (!%p138_p2), %v177_v5, 1  ;;  %vm261_vm2 = vcmp.lt.s32.totalorder (!%p138_p2), %v177_v5, 1  ;;  %vm342_vm3 = vcmp.lt.s32.totalorder (!%p138_p2), %v177_v5, 7  ;;  %v180_v32 = vadd.s32 (!%p138_p2), 24, %v177_v5 }
   0xb   : > { %vm337_vm5 = vcmp.lt.s32.totalorder (!%p138_p2), %v180_v32, 31 }
   0xd   : > { %s639_s13 = smov (!%p161_p3, %s479_s13), 1 }
   0xe   : > { %s497_s20 = sshll.u32 %s639_s13, 5 }
   0xf   : > { %s165_s23 = scalar_lea.vmem %s634_s0, %s497_s20  ;;  %s170_s28 = scalar_lea.vmem %s637_s3, %s497_s20 }
  0x10   : > { %v172_v7 = vld [vmem:[%s165_s23] sm:$0xff]  ;;  %v173_v8 = vld [vmem:[%s165_s23 + $0x8] sm:$0xff]  ;;  %v175_v9 = vld [vmem:[%s165_s23 + $0x18] sm:$0xff] }
  0x11   : > { %v257_v10 = vrot.slane %v172_v7, 7  ;;  %v258_v11 = vrot.slane %v173_v8, 7  ;;  %v260_v12 = vrot.slane %v175_v9, 7  ;;  %v338_v13 = vrot.slane %v172_v7, 1  ;;  %v174_v14 = vld [vmem:[%s165_s23 + $0x10] sm:$0xff] }
  0x12   : > { %v339_v15 = vrot.slane %v173_v8, 1  ;;  %v259_v16 = vrot.slane %v174_v14, 7  ;;  %v184_v17 = vpack.c.bf16 %v173_v8, %v172_v7  ;;  %v185_v20 = vpack.c.bf16 %v175_v9, %v174_v14 }
  0x13   : > { %v264_v18 = vsel %vm261_vm2, %v257_v10, %v258_v11  ;;  %v265_v19 = vsel %vm261_vm2, %v260_v12, %v257_v10  ;;  %v340_v21 = vrot.slane %v174_v14, 1  ;;  %v341_v29 = vrot.slane %v175_v9, 1 }
  0x14   : > { %v266_v22 = vsel %vm253_vm1, %v265_v19, 0.0  ;;  %v262_v23 = vsel %vm261_vm2, %v259_v16, %v260_v12  ;;  %v263_v24 = vsel %vm261_vm2, %v258_v11, %v259_v16  ;;  %510 = vmatprep.mubr.msk.bf16.mxu1 %vm193_vm4, %v184_v17  ;;  %v345_v25 = vsel %vm342_vm3, %v338_v13, %v339_v15 }
  0x15   : > { %v270_v26 = vpack.c.bf16 %v264_v18, %v266_v22  ;;  %v271_v27 = vpack.c.bf16 %v262_v23, %v263_v24  ;;  %511 = vmatmul.mubr.msk.bf16.vlgmr.msra.gmra.mrb[0].mxu1 %vm193_vm4, %v185_v20  ;;  %v344_v28 = vsel %vm342_vm3, %v339_v15, %v340_v21  ;;  %v346_v33 = vsel %vm342_vm3, %v341_v29, %v338_v13 }
  0x16   : > { %v351_v31 = vpack.c.bf16 %v344_v28, %v345_v25  ;;  %v343_v34 = vsel %vm342_vm3, %v340_v21, %v341_v29  ;;  %v350_v35 = vsel %vm337_vm5, %v346_v33, 0.0 }
  0x17   : > { %516 = vmatprep.mubr.msk.bf16.mxu0 %vm193_vm4, %v270_v26  ;;  %v352_v36 = vpack.c.bf16 %v350_v35, %v343_v34 }
  0x18   : > { %517 = vmatmul.mubr.msk.bf16.vlgmr.msra.gmra.mrb[0].mxu0 %vm193_vm4, %v271_v27 }
  0x19   : > { %521 = vmatpush3.bf16.msra.mxu0 %v360_v30  ;;  %522 = vmatprep.mubr.msk.bf16.mxu0 %vm193_vm4, %v351_v31 }
  0x24   : > { %523 = vmatmul.mubr.msk.bf16.vlgmr.msra.gmra.mrb[0].mxu0 %vm193_vm4, %v352_v36 }
  0xe8   : > { %v512_v37 = vpop.f32.mrb[0].mxu1 }
  0xe9   : > { %v238_v38 = vpop.f32.mrb[1].mxu1  ;;  %v247_v42 = vadd.f32 %v512_v37, %v488_v41 }
  0xea   : > { %v513_v39 = vpop.f32.mrb[2].mxu1  ;;  %v239_v43 = vadd.f32 %v488_v41, %v238_v38 }
  0xeb   : > { %v241_v40 = vpop.f32.mrb[3].mxu1  ;;  %v250_v45 = vadd.f32 %v513_v39, %v488_v41 }
  0xec   : > { %v242_v48 = vadd.f32 %v488_v41, %v241_v40 }
  0xf7   : > { %v524_v44 = vpop.f32.mrb[0].mxu0 }
  0xf8   : > { %v527_v46 = vadd.f32 %v524_v44, %v247_v42  ;;  %v396_v47 = vpop.f32.mrb[1].mxu0 }
  0xf9   : > { %v529_v49 = vadd.f32 %v396_v47, %v239_v43  ;;  %v525_v50 = vpop.f32.mrb[2].mxu0 }
  0xfa   : > { %v417_v51 = vmax.f32 %v527_v46, 0.0  ;;  %v531_v52 = vadd.f32 %v525_v50, %v250_v45  ;;  %v399_v53 = vpop.f32.mrb[3].mxu0 }
  0xfb   : > { %v415_v54 = vmax.f32 %v529_v49, 0.0  ;;  %v533_v55 = vadd.f32 %v399_v53, %v242_v48 }
  0xfc   : > { %422 = vst.msk [vmem:[%s170_s28 + $0x10] sm:$0xff] %vm419_vm6, %v417_v51  ;;  %v418_v56 = vmax.f32 %v531_v52, 0.0 }
  0xfd   : > { %420 = vst.msk [vmem:[%s170_s28] sm:$0xff] %vm419_vm6, %v415_v54  ;;  %v416_v57 = vmax.f32 %v533_v55, 0.0 }
  0xfe   : > { %423 = vst.msk [vmem:[%s170_s28 + $0x18] sm:$0xff] %vm419_vm6, %v418_v56 }
  0xff   : > { %421 = vst.msk [vmem:[%s170_s28 + $0x8] sm:$0xff] %vm419_vm6, %v416_v57 }
 0x100 PF: > { %s13_s12 = sadd.s32 1, %s555_s12  }
 0x101   : > { %p10_p4 = scmp.ge.s32.totalorder %s13_s12, 4  }
 0x103   :  { %12 = sbr.rel (!%p10_p4) target bundleno = 1 (0x1), region = 62 }

// kernel: spatial_conv_encoder.5
= control target key start
LH: loop header
LB: loop body
LE: loop exit
PB: predicated region body
PF: predicated region fallthrough
CT: control target
= control target key end

     0   :  { %s519_s12 = smov 0   ;;  %s561_s0 = inlined_call_operand.vmem [shape: f32[2,16,16], index: 0, kind: input, shape index: {}]   ;;  %s562_s1 = inlined_call_operand.vmem [shape: bf16[3,16,8], index: 1, kind: input, shape index: {}]   ;;  %s563_s2 = inlined_call_operand.vmem [shape: f32[1,8], index: 2, kind: input, shape index: {}]   ;;  %s564_s3 = inlined_call_operand.vmem [shape: f32[2,16,8], index: 3, kind: output, shape index: {}]  }
   0x1 LB: > { %s424_s13 = sadd.s32 4294967295, %s495_s12   ;;  %p428_p0 = scmp.ge.s32.totalorder %s495_s12, 1  ;;  %s495_s12 = sphi %s519_s12, %s13_s12  }
   0x2   : > { %p137_p1 = scmp.lt.s32.totalorder %s495_s12, 3 }
   0x4   : > { %p138_p2 = pnand %p428_p0, %p137_p1 }
   0x5   : > { %v486_v0 = vld [vmem:[%s562_s1] sm:$0xff] (!%p138_p2)   ;;  %v174_v1 = vlaneseq (!%p138_p2)  ;;  %v497_v2 = vmov (!%p138_p2), 0.0   ;;  %p161_p3 = scmp.lt.s32.totalorder (!%p138_p2), %s424_s13, 1  ;;  %vm498_vm0 = vmmov (!%p138_p2), 0   ;;  %v488_v3 = vld [vmem:[%s562_s1 + $0x8] sm:$0xff] (!%p138_p2)   ;;  %vm197_vm3 = vcmask (!%p138_p2), 130048  }
   0x6   : > { %141 = sbr.rel (%p138_p2) target bundleno = 252 (0xfc), region = 32  ;;  %456 = vmatprep.subr.bf16.mxu0 (!%p138_p2), %v497_v2  ;;  %450 = vmatprep.subr.bf16.mxu1 (!%p138_p2), %v497_v2  ;;  %v487_v13 = vld [vmem:[%s562_s1 + $0x10] sm:$0xff] (!%p138_p2)   ;;  %v433_v26 = vld [vmem:[%s563_s2] ss:$0 sm:$0xff] (!%p138_p2)  ;;  %vm366_vm6 = vcmask (!%p138_p2), 64512  }
   0x7   : > { %457 = vmatpush3.bf16.msra.mxu0 (!%p138_p2), %v486_v0  ;;  %458 = vmatprep.mubr.msk.bf16.mxu0 (!%p138_p2), %vm498_vm0, %v497_v2  ;;  %v175_v4 = vshrl.u32 (!%p138_p2), %v174_v1, 7 }
   0x8   : > { %462 = vmatprep.subr.bf16.mxu0 (!%p138_p2), %v497_v2  ;;  %452 = vmatprep.mubr.msk.bf16.mxu1 (!%p138_p2), %vm498_vm0, %v497_v2 }
   0x9   : > { %451 = vmatpush3.bf16.msra.mxu1 (!%p138_p2), %v488_v3  ;;  %vm246_vm1 = vcmp.lt.s32.totalorder (!%p138_p2), %v175_v4, 1  ;;  %vm242_vm2 = vcmp.ge.s32.totalorder (!%p138_p2), %v175_v4, 1  ;;  %v176_v15 = vadd.s32 (!%p138_p2), 8, %v175_v4  ;;  %vm308_vm4 = vcmp.lt.s32.totalorder (!%p138_p2), %v175_v4, 7 }
   0xb   : > { %vm305_vm5 = vcmp.lt.s32.totalorder (!%p138_p2), %v176_v15, 15 }
   0xd   : > { %s566_s13 = smov (!%p161_p3, %s424_s13), 1 }
   0xe   : > { %s442_s18 = sshll.u32 %s566_s13, 4 }
   0xf   : > { %s165_s21 = scalar_lea.vmem %s561_s0, %s442_s18  ;;  %s170_s28 = scalar_lea.vmem %s564_s3, %s442_s18 }
  0x10   : > { %v172_v5 = vld [vmem:[%s165_s21] sm:$0xff]  ;;  %v173_v6 = vld [vmem:[%s165_s21 + $0x8] sm:$0xff] }
  0x11   : > { %v244_v7 = vrot.slane %v172_v5, 7  ;;  %v245_v8 = vrot.slane %v173_v6, 7  ;;  %v183_v9 = vpack.c.bf16 %v173_v6, %v172_v5  ;;  %v306_v16 = vrot.slane %v172_v5, 1 }
  0x12   : > { %v307_v17 = vrot.slane %v173_v6, 1 }
  0x13   : > { %v247_v10 = vsel %vm246_vm1, %v244_v7, %v245_v8  ;;  %v248_v11 = vsel %vm246_vm1, %v245_v8, %v244_v7  ;;  %453 = vmatmul.mubr.msk.bf16.vlgmr.msra.gmra.mrb[0].mxu1 %vm197_vm3, %v183_v9 }
  0x14   : > { %v249_v12 = vsel %vm242_vm2, %v248_v11, 0.0  ;;  %v310_v18 = vsel %vm308_vm4, %v307_v17, %v306_v16  ;;  %v309_v19 = vsel %vm308_vm4, %v306_v16, %v307_v17 }
  0x15   : > { %v251_v14 = vpack.c.bf16 %v247_v10, %v249_v12  ;;  %v312_v20 = vsel %vm305_vm5, %v310_v18, 0.0 }
  0x16   : > { %v313_v21 = vpack.c.bf16 %v312_v20, %v309_v19 }
  0x17   : > { %459 = vmatmul.mubr.msk.bf16.vlgmr.msra.gmra.mrb[0].mxu0 %vm197_vm3, %v251_v14 }
  0x18   : > { %463 = vmatpush3.bf16.msra.mxu0 %v487_v13  ;;  %464 = vmatprep.mubr.msk.bf16.mxu0 %vm498_vm0, %v497_v2 }
  0x23   : > { %465 = vmatmul.mubr.msk.bf16.vlgmr.msra.gmra.mrb[0].mxu0 %vm197_vm3, %v313_v21 }
  0xe6   : > { %v235_v22 = vpop.f32.mrb[0].mxu1 }
  0xe7   : > { %v454_v23 = vpop.f32.mrb[1].mxu1  ;;  %v236_v27 = vadd.f32 %v433_v26, %v235_v22 }
  0xe8   : > { %v238_v24 = vpop.f32.mrb[2].mxu1 }
  0xe9   : > { %v455_v25 = vpop.f32.mrb[3].mxu1  ;;  %v239_v29 = vadd.f32 %v433_v26, %v238_v24 }
  0xf6   : > { %v357_v28 = vpop.f32.mrb[0].mxu0 }
  0xf7   : > { %v469_v30 = vadd.f32 %v357_v28, %v236_v27  ;;  %v466_v31 = vpop.f32.mrb[1].mxu0 }
  0xf8   : > { %v360_v32 = vpop.f32.mrb[2].mxu0 }
  0xf9   : > { %367 = vst.msk [vmem:[%s170_s28] sm:$0xff] %vm366_vm6, %v469_v30  ;;  %v471_v33 = vadd.f32 %v360_v32, %v239_v29  ;;  %v467_v34 = vpop.f32.mrb[3].mxu0 }
  0xfb   : > { %368 = vst.msk [vmem:[%s170_s28 + $0x8] sm:$0xff] %vm366_vm6, %v471_v33 }
  0xfc PF: > { %s13_s12 = sadd.s32 1, %s495_s12  }
  0xfd   : > { %p10_p4 = scmp.ge.s32.totalorder %s13_s12, 4  }
  0xff   :  { %12 = sbr.rel (!%p10_p4) target bundleno = 1 (0x1), region = 62 }

// kernel: spatial_conv_encoder.4
= control target key start
LH: loop header
LB: loop body
LE: loop exit
PB: predicated region body
PF: predicated region fallthrough
CT: control target
= control target key end

     0   :  { %s2128_s17 = smov 0   ;;  %s2403_s0 = inlined_call_operand.vmem [shape: f32[2,16,32], index: 0, kind: input, shape index: {}]   ;;  %s2404_s1 = inlined_call_operand.vmem [shape: bf16[3,32,16], index: 1, kind: input, shape index: {}]   ;;  %s2405_s2 = inlined_call_operand.vmem [shape: f32[1,16], index: 2, kind: input, shape index: {}]   ;;  %s2406_s3 = inlined_call_operand.vmem [shape: bf16[2,3,16,16], index: 3, kind: input, shape index: {}]   ;;  %s2407_s4 = inlined_call_operand.vmem [shape: f32[2,1,16], index: 4, kind: input, shape index: {}]   ;;  %s2408_s5 = inlined_call_operand.vmem [shape: bf16[2,16,16], index: 5, kind: input, shape index: {}]   ;;  %s2409_s6 = inlined_call_operand.vmem [shape: f32[2,1,16], index: 6, kind: input, shape index: {}]   ;;  %s2410_s7 = inlined_call_operand.vmem [shape: bf16[2,3,16,16], index: 7, kind: input, shape index: {}]   ;;  %s2411_s8 = inlined_call_operand.vmem [shape: f32[2,1,16], index: 8, kind: input, shape index: {}]   ;;  %s2412_s9 = inlined_call_operand.vmem [shape: bf16[2,16,16], index: 9, kind: input, shape index: {}]   ;;  %s2413_s10 = inlined_call_operand.vmem [shape: f32[2,1,16], index: 10, kind: input, shape index: {}]   ;;  %s2414_s11 = inlined_call_operand.vmem [shape: f32[2,16,16], index: 11, kind: output, shape index: {}]  }
   0x1 LB: > { %s1734_s18 = sadd.s32 4294967295, %s2064_s17   ;;  %p1738_p0 = scmp.ge.s32.totalorder %s2064_s17, 1  ;;  %s2064_s17 = sphi %s2128_s17, %s21_s17  }
   0x2   : > { %p337_p1 = scmp.lt.s32.totalorder %s2064_s17, 3 }
   0x4   : > { %p338_p2 = pnand %p1738_p0, %p337_p1 }
   0x5   : > { %v2036_v0 = vld [vmem:[%s2404_s1 + $0x10] sm:$0xff] (!%p338_p2)   ;;  %v390_v1 = vlaneseq (!%p338_p2)  ;;  %v2066_v2 = vmov (!%p338_p2), 0.0   ;;  %v2037_v3 = vld [vmem:[%s2404_s1 + $0x18] sm:$0xff] (!%p338_p2)   ;;  %vm2067_vm0 = vmmov (!%p338_p2), 0   ;;  %p377_p3 = scmp.lt.s32.totalorder (!%p338_p2), %s1734_s18, 1  ;;  %v2038_v5 = vld [vmem:[%s2404_s1] sm:$0xff] (!%p338_p2)  }
   0x6   : > { %341 = sbr.rel (%p338_p2) target bundleno = 2378 (0x94a), region = 64  ;;  %1858 = vmatprep.subr.bf16.mxu0 (!%p338_p2), %v2066_v2  ;;  %1882 = vmatprep.subr.bf16.mxu1 (!%p338_p2), %v2066_v2  ;;  %vm425_vm1 = vcmask (!%p338_p2), 261120   ;;  %v2039_v12 = vld [vmem:[%s2404_s1 + $0x8] sm:$0xff] (!%p338_p2)   ;;  %v2040_v16 = vld [vmem:[%s2404_s1 + $0x20] sm:$0xff] (!%p338_p2)   ;;  %vm683_vm6 = vcmask (!%p338_p2), 130048   ;;  %v2044_v44 = vld [vmem:[%s2406_s3 + $0x10] sm:$0xff] (!%p338_p2)  }
   0x7   : > { %1859 = vmatpush3.bf16.msra.mxu0 (!%p338_p2), %v2036_v0  ;;  %1862 = vmatprep.mubr.msk.bf16.mxu0 (!%p338_p2), %vm2067_vm0, %v2066_v2  ;;  %v2151_v4 = vshrl.u32 (!%p338_p2), %v390_v1, 7  ;;  %v2041_v20 = vld [vmem:[%s2404_s1 + $0x28] sm:$0xff] (!%p338_p2)   ;;  %v1743_v25 = vld [vmem:[%s2405_s2] ss:$0 sm:$0xff] (!%p338_p2)  ;;  %v2047_v0 = vld [vmem:[%s2406_s3 + $0x18] sm:$0xff] (!%p338_p2)  }
   0x8   : > { %1860 = vmatprep.subr.bf16.mxu0 (!%p338_p2), %v2066_v2  ;;  %1884 = vmatprep.mubr.msk.bf16.mxu1 (!%p338_p2), %vm2067_vm0, %v2066_v2  ;;  %v2042_v32 = vld [vmem:[%s2406_s3 + $0x8] sm:$0xff] (!%p338_p2)   ;;  %v2043_v37 = vld [vmem:[%s2406_s3] sm:$0xff] (!%p338_p2)  }
   0x9   : > { %vm474_vm2 = vcmp.lt.s32.totalorder (!%p338_p2), %v2151_v4, 1  ;;  %vm470_vm3 = vcmp.ge.s32.totalorder (!%p338_p2), %v2151_v4, 1  ;;  %v2183_v19 = vadd.s32 (!%p338_p2), 8, %v2151_v4  ;;  %vm542_vm4 = vcmp.lt.s32.totalorder (!%p338_p2), %v2151_v4, 7  ;;  %1883 = vmatpush3.bf16.msra.mxu1 (!%p338_p2), %v2042_v32  ;;  %v2045_v52 = vld [vmem:[%s2408_s5] sm:$0xff] (!%p338_p2)  }
   0xa   : > { %1888 = vmatprep.subr.bf16.mxu1 (!%p338_p2), %v2066_v2  ;;  %vm656_vm7 = vcmp.lt.s32.totalorder (!%p338_p2), %v2151_v4, 3  ;;  %vm606_vm8 = vcmp.ge.s32.totalorder (!%p338_p2), %v2151_v4, 3  ;;  %vm665_vm9 = vcmp.lt.s32.totalorder (!%p338_p2), %v2151_v4, 5  ;;  %v1753_v53 = vld [vmem:[%s2407_s4] ss:$0 sm:$0xff] (!%p338_p2) }
   0xb   : > { %1861 = vmatpush3.bf16.msra.mxu0 (!%p338_p2), %v2037_v3  ;;  %vm539_vm5 = vcmp.lt.s32.totalorder (!%p338_p2), %v2183_v19, 15  ;;  %vm609_vm10 = vcmp.lt.s32.totalorder (!%p338_p2), %v2183_v19, 13  ;;  %v2046_v63 = vld [vmem:[%s2406_s3 + $0x20] sm:$0xff] (!%p338_p2)  }
   0xc   : > { %1866 = vmatprep.subr.bf16.mxu0 (!%p338_p2), %v2066_v2  ;;  %v1760_v1 = vld [vmem:[%s2409_s6] ss:$0 sm:$0xff] (!%p338_p2) }
   0xd   : > { %s2416_s18 = smov (!%p377_p3, %s1734_s18), 1 }
   0xe   : > { %s1815_s23 = sshll.u32 %s2416_s18, 4 }
   0xf   : > { %s381_s28 = scalar_lea.vmem %s2403_s0, %s1815_s23  ;;  %s386_s22 = scalar_lea.vmem %s2414_s11, %s1815_s23 }
  0x10   : > { %v388_v6 = vld [vmem:[%s381_s28] sm:$0xff]  ;;  %v389_v7 = vld [vmem:[%s381_s28 + $0x8] sm:$0xff] }
  0x11   : > { %v405_v8 = vpack.c.bf16 %v389_v7, %v388_v6  ;;  %v472_v9 = vrot.slane %v388_v6, 7  ;;  %v473_v10 = vrot.slane %v389_v7, 7  ;;  %v540_v17 = vrot.slane %v388_v6, 1 }
  0x12   : > { %v541_v18 = vrot.slane %v389_v7, 1 }
  0x13   : > { %1863 = vmatmul.mubr.msk.bf16.vlgmr.msra.gmra.mrb[0].mxu0 %vm425_vm1, %v405_v8  ;;  %v476_v11 = vsel %vm474_vm2, %v473_v10, %v472_v9  ;;  %v475_v14 = vsel %vm474_vm2, %v472_v9, %v473_v10 }
  0x14   : > { %1867 = vmatpush3.bf16.msra.mxu0 %v2038_v5  ;;  %1870 = vmatprep.mubr.msk.bf16.mxu0 %vm2067_vm0, %v2066_v2  ;;  %v477_v13 = vsel %vm470_vm3, %v476_v11, 0.0  ;;  %v544_v21 = vsel %vm542_vm4, %v541_v18, %v540_v17  ;;  %v543_v22 = vsel %vm542_vm4, %v540_v17, %v541_v18 }
  0x15   : > { %1868 = vmatprep.subr.bf16.mxu0 %v2066_v2  ;;  %v479_v15 = vpack.c.bf16 %v475_v14, %v477_v13  ;;  %v546_v23 = vsel %vm539_vm5, %v544_v21, 0.0  ;;  %v2048_v21 = vld [vmem:[%s2406_s3 + $0x28] sm:$0xff]  }
  0x16   : > { %v547_v24 = vpack.c.bf16 %v546_v23, %v543_v22 }
  0x18   : > { %1869 = vmatpush3.bf16.msra.mxu0 %v2039_v12 }
  0x19   : > { %1874 = vmatprep.subr.bf16.mxu0 %v2066_v2 }
  0x1f   : > { %1871 = vmatmul.mubr.msk.bf16.vlgmr.msra.gmra.mrb[0].mxu0 %vm425_vm1, %v479_v15 }
  0x20   : > { %1875 = vmatpush3.bf16.msra.mxu0 %v2040_v16  ;;  %1878 = vmatprep.mubr.msk.bf16.mxu0 %vm2067_vm0, %v2066_v2 }
  0x21   : > { %1876 = vmatprep.subr.bf16.mxu0 %v2066_v2 }
  0x24   : > { %1877 = vmatpush3.bf16.msra.mxu0 %v2041_v20 }
  0x25   : > { %1912 = vmatprep.subr.bf16.mxu0 %v2066_v2 }
  0x2b   : > { %1879 = vmatmul.mubr.msk.bf16.vlgmr.msra.gmra.mrb[0].mxu0 %vm425_vm1, %v547_v24 }
  0x2c   : > { %1914 = vmatprep.mubr.msk.bf16.mxu0 %vm2067_vm0, %v2066_v2  ;;  %1913 = vmatpush3.bf16.msra.mxu0 %v2047_v0 }
  0x2d   : > { %1918 = vmatprep.subr.bf16.mxu0 %v2066_v2 }
  0xfe   : > { %v597_v26 = vpop.f32.mrb[0].mxu0 }
  0xff   : > { %v1880_v27 = vpop.f32.mrb[1].mxu0  ;;  %v1978_v28 = vadd.f32 %v1743_v25, %v597_v26 }
 0x100   : > { %v600_v29 = vpop.f32.mrb[2].mxu0 }
 0x101   : > { %610 = vxpose.xlu0.b32.start [1/2] (short) (narrow) %v1978_v28, 16  ;;  %v1881_v30 = vpop.f32.mrb[3].mxu0  ;;  %v1979_v31 = vadd.f32 %v1743_v25, %v600_v29  ;;  %v2049_v29 = vld [vmem:[%s2408_s5 + $0x8] sm:$0xff]  }
 0x105   : > { %611 = vxpose.xlu0.b32.end [2/2] (short) (narrow) %v1979_v31, 16 }
 0x181   : > { %v626_v33 = vpop.trf.xlu0 }
 0x182   : > { %v652_v35 = vmax.f32 %v626_v33, 0.0 }
 0x184   : > { %v654_v40 = vrot.slane %v652_v35, 5  ;;  %v663_v47 = vrot.slane %v652_v35, 3 }
 0x185   : > { %v2211_v34 = vpop.trf.xlu0 }
 0x186   : > { %v653_v36 = vmax.f32 %v2211_v34, 0.0 }
 0x188   : > { %v662_v38 = vpack.c.bf16 %v653_v36, %v652_v35  ;;  %v655_v39 = vrot.slane %v653_v36, 5  ;;  %v664_v46 = vrot.slane %v653_v36, 3 }
 0x18a   : > { %1885 = vmatmul.mubr.msk.bf16.vlgmr.msra.gmra.mrb[0].mxu1 %vm683_vm6, %v662_v38  ;;  %v658_v41 = vsel %vm656_vm7, %v655_v39, %v654_v40  ;;  %v657_v42 = vsel %vm656_vm7, %v654_v40, %v655_v39  ;;  %v667_v48 = vsel %vm665_vm9, %v664_v46, %v663_v47  ;;  %v666_v49 = vsel %vm665_vm9, %v663_v47, %v664_v46  ;;  %v1780_v46 = vld [vmem:[%s2409_s6 + $0x1] ss:$0 sm:$0xff] }
 0x18b   : > { %1889 = vmatpush3.bf16.msra.mxu1 %v2043_v37  ;;  %1890 = vmatprep.mubr.msk.bf16.mxu1 %vm2067_vm0, %v2066_v2  ;;  %v659_v43 = vsel %vm606_vm8, %v658_v41, 0.0  ;;  %v669_v50 = vsel %vm609_vm10, %v667_v48, 0.0 }
 0x18c   : > { %1894 = vmatprep.subr.bf16.mxu1 %v2066_v2  ;;  %v661_v45 = vpack.c.bf16 %v657_v42, %v659_v43  ;;  %v670_v51 = vpack.c.bf16 %v669_v50, %v666_v49 }
 0x196   : > { %1891 = vmatmul.mubr.msk.bf16.vlgmr.msra.gmra.mrb[0].mxu1 %vm683_vm6, %v661_v45 }
 0x197   : > { %1895 = vmatpush3.bf16.msra.mxu1 %v2044_v44  ;;  %1896 = vmatprep.mubr.msk.bf16.mxu1 %vm2067_vm0, %v2066_v2 }
 0x198   : > { %1900 = vmatprep.subr.bf16.mxu1 %v2066_v2 }
 0x1a2   : > { %1897 = vmatmul.mubr.msk.bf16.vlgmr.msra.gmra.mrb[0].mxu1 %vm683_vm6, %v670_v51 }
 0x1a3   : > { %1902 = vmatprep.mubr.msk.bf16.mxu1 %vm2067_vm0, %v2066_v2  ;;  %1901 = vmatpush3.bf16.msra.mxu1 %v2045_v52 }
 0x1a4   : > { %1906 = vmatprep.subr.bf16.mxu1 %v2066_v2 }
 0x275   : > { %v823_v54 = vpop.f32.mrb[0].mxu1 }
 0x276   : > { %v1980_v55 = vadd.f32 %v1753_v53, %v823_v54  ;;  %v1898_v56 = vpop.f32.mrb[1].mxu1 }
 0x277   : > { %v826_v57 = vpop.f32.mrb[2].mxu1 }
 0x278   : > { %v1981_v58 = vadd.f32 %v1753_v53, %v826_v57  ;;  %v1899_v59 = vpop.f32.mrb[3].mxu1  ;;  %v832_v60 = vmax.f32 %v1980_v55, 0.0  ;;  %v2050_v55 = vld [vmem:[%s2410_s7 + $0x8] sm:$0xff]  }
 0x27a   : > { %v833_v61 = vmax.f32 %v1981_v58, 0.0 }
 0x27c   : > { %v834_v62 = vpack.c.bf16 %v833_v61, %v832_v60  ;;  %v2051_v60 = vld [vmem:[%s2410_s7] sm:$0xff]  }
 0x27e   : > { %1903 = vmatmul.mubr.msk.bf16.vlgmr.msra.gmra.mrb[4].mxu1 %vm683_vm6, %v834_v62 }
 0x27f   : > { %1908 = vmatprep.mubr.msk.bf16.mxu1 %vm2067_vm0, %v2066_v2  ;;  %1907 = vmatpush3.bf16.msra.mxu1 %v2046_v63 }
 0x280   : > { %1924 = vmatprep.subr.bf16.mxu1 %v2066_v2 }
 0x351   : > { %v884_v3 = vpop.f32.mrb[4].mxu1 }
 0x352   : > { %v885_v5 = vadd.f32 %v1760_v1, %v884_v3  ;;  %v1904_v6 = vpop.f32.mrb[5].mxu1 }
 0x353   : > { %v887_v7 = vpop.f32.mrb[6].mxu1 }
 0x354   : > { %v891_v8 = vadd.f32 %v885_v5, %v626_v33  ;;  %v888_v9 = vadd.f32 %v1760_v1, %v887_v7  ;;  %v1905_v10 = vpop.f32.mrb[7].mxu1  ;;  %v2052_v5 = vld [vmem:[%s2410_s7 + $0x10] sm:$0xff]  }
 0x356   : > { %v907_v11 = vmax.f32 %v891_v8, 0.0  ;;  %v892_v12 = vadd.f32 %v888_v9, %v2211_v34  ;;  %v1773_v34 = vld [vmem:[%s2407_s4 + $0x1] ss:$0 sm:$0xff] }
 0x358   : > { %v908_v13 = vmax.f32 %v892_v12, 0.0  ;;  %v909_v14 = vrot.slane %v907_v11, 7  ;;  %v917_v24 = vrot.slane %v907_v11, 1 }
 0x35a   : > { %v910_v15 = vrot.slane %v908_v13, 7  ;;  %v916_v16 = vpack.c.bf16 %v908_v13, %v907_v11  ;;  %v918_v23 = vrot.slane %v908_v13, 1  ;;  %v2053_v13 = vld [vmem:[%s2412_s9] sm:$0xff]  }
 0x35c   : > { %v912_v17 = vsel %vm474_vm2, %v910_v15, %v909_v14  ;;  %1909 = vmatmul.mubr.msk.bf16.vlgmr.msra.gmra.mrb[8].mxu1 %vm683_vm6, %v916_v16  ;;  %v911_v18 = vsel %vm474_vm2, %v909_v14, %v910_v15  ;;  %v920_v25 = vsel %vm542_vm4, %v918_v23, %v917_v24  ;;  %v919_v26 = vsel %vm542_vm4, %v917_v24, %v918_v23  ;;  %v1783_v14 = vld [vmem:[%s2411_s8] ss:$0 sm:$0xff] }
 0x35d   : > { %v913_v20 = vsel %vm470_vm3, %v912_v17, 0.0  ;;  %1926 = vmatprep.mubr.msk.bf16.mxu1 %vm2067_vm0, %v2066_v2  ;;  %v922_v27 = vsel %vm539_vm5, %v920_v25, 0.0  ;;  %1925 = vmatpush3.bf16.msra.mxu1 %v2049_v29  ;;  %v2054_v25 = vld [vmem:[%s2410_s7 + $0x20] sm:$0xff]  }
 0x35e   : > { %v915_v22 = vpack.c.bf16 %v911_v18, %v913_v20  ;;  %v923_v28 = vpack.c.bf16 %v922_v27, %v919_v26  ;;  %1930 = vmatprep.subr.bf16.mxu1 %v2066_v2  ;;  %v1790_v26 = vld [vmem:[%s2413_s10] ss:$0 sm:$0xff] }
 0x360   : > { %1915 = vmatmul.mubr.msk.bf16.vlgmr.msra.gmra.mrb[4].mxu0 %vm683_vm6, %v915_v22 }
 0x361   : > { %1919 = vmatpush3.bf16.msra.mxu0 %v2048_v21  ;;  %1920 = vmatprep.mubr.msk.bf16.mxu0 %vm2067_vm0, %v2066_v2 }
 0x362   : > { %1948 = vmatprep.subr.bf16.mxu0 %v2066_v2 }
 0x36c   : > { %1921 = vmatmul.mubr.msk.bf16.vlgmr.msra.gmra.mrb[4].mxu0 %vm683_vm6, %v923_v28 }
 0x36d   : > { %1950 = vmatprep.mubr.msk.bf16.mxu0 %vm2067_vm0, %v2066_v2  ;;  %1949 = vmatpush3.bf16.msra.mxu0 %v2053_v13 }
 0x36e   : > { %1954 = vmatprep.subr.bf16.mxu0 %v2066_v2 }
 0x42f   : > { %v973_v30 = vpop.f32.mrb[8].mxu1 }
 0x430   : > { %v1910_v31 = vpop.f32.mrb[9].mxu1  ;;  %v974_v35 = vadd.f32 %v1773_v34, %v973_v30 }
 0x431   : > { %v976_v32 = vpop.f32.mrb[10].mxu1 }
 0x432   : > { %v1911_v33 = vpop.f32.mrb[11].mxu1  ;;  %v977_v37 = vadd.f32 %v1773_v34, %v976_v32 }
 0x43f   : > { %v1075_v36 = vpop.f32.mrb[4].mxu0 }
 0x440   : > { %v1983_v38 = vadd.f32 %v1075_v36, %v974_v35  ;;  %v1922_v39 = vpop.f32.mrb[5].mxu0 }
 0x441   : > { %v1078_v40 = vpop.f32.mrb[6].mxu0 }
 0x442   : > { %v1985_v41 = vadd.f32 %v1078_v40, %v977_v37  ;;  %v1923_v42 = vpop.f32.mrb[7].mxu0  ;;  %v1084_v43 = vmax.f32 %v1983_v38, 0.0  ;;  %v2055_v37 = vld [vmem:[%s2410_s7 + $0x18] sm:$0xff]  }
 0x444   : > { %v1085_v44 = vmax.f32 %v1985_v41, 0.0 }
 0x446   : > { %v1086_v45 = vpack.c.bf16 %v1085_v44, %v1084_v43  ;;  %v2056_v44 = vld [vmem:[%s2410_s7 + $0x28] sm:$0xff]  }
 0x448   : > { %1927 = vmatmul.mubr.msk.bf16.vlgmr.msra.gmra.mrb[12].mxu1 %vm683_vm6, %v1086_v45 }
 0x449   : > { %1932 = vmatprep.mubr.msk.bf16.mxu1 %vm2067_vm0, %v2066_v2  ;;  %1931 = vmatpush3.bf16.msra.mxu1 %v2050_v55 }
 0x44a   : > { %1936 = vmatprep.subr.bf16.mxu1 %v2066_v2 }
 0x51b   : > { %v1136_v47 = vpop.f32.mrb[12].mxu1 }
 0x51c   : > { %v1137_v48 = vadd.f32 %v1780_v46, %v1136_v47  ;;  %v1928_v49 = vpop.f32.mrb[13].mxu1 }
 0x51d   : > { %v1139_v50 = vpop.f32.mrb[14].mxu1 }
 0x51e   : > { %v1140_v51 = vadd.f32 %v1780_v46, %v1139_v50  ;;  %v1929_v52 = vpop.f32.mrb[15].mxu1  ;;  %v1143_v53 = vadd.f32 %v1137_v48, %v891_v8 }
 0x51f   : > { %v2057_v52 = vld [vmem:[%s2412_s9 + $0x8] sm:$0xff]  }
 0x520   : > { %1145 = vxpose.xlu1.b32.start [1/2] (short) (narrow) %v1143_v53, 16  ;;  %v1144_v54 = vadd.f32 %v1140_v51, %v892_v12 }
 0x524   : > { %1146 = vxpose.xlu1.b32.end [2/2] (short) (narrow) %v1144_v54, 16 }
 0x5a0   : > { %v1161_v56 = vpop.trf.xlu1 }
 0x5a1   : > { %v1187_v58 = vmax.f32 %v1161_v56, 0.0 }
 0x5a3   : > { %v1189_v63 = vrot.slane %v1187_v58, 5  ;;  %v1197_v8 = vrot.slane %v1187_v58, 3 }
 0x5a4   : > { %v1162_v57 = vpop.trf.xlu1 }
 0x5a5   : > { %v1188_v59 = vmax.f32 %v1162_v57, 0.0 }
 0x5a7   : > { %v1196_v61 = vpack.c.bf16 %v1188_v59, %v1187_v58  ;;  %v1190_v62 = vrot.slane %v1188_v59, 5  ;;  %v1198_v7 = vrot.slane %v1188_v59, 3 }
 0x5a9   : > { %1933 = vmatmul.mubr.msk.bf16.vlgmr.msra.gmra.mrb[16].mxu1 %vm683_vm6, %v1196_v61  ;;  %v1192_v0 = vsel %vm656_vm7, %v1190_v62, %v1189_v63  ;;  %v1191_v1 = vsel %vm656_vm7, %v1189_v63, %v1190_v62  ;;  %v1200_v9 = vsel %vm665_vm9, %v1198_v7, %v1197_v8  ;;  %v1199_v10 = vsel %vm665_vm9, %v1197_v8, %v1198_v7 }
 0x5aa   : > { %1937 = vmatpush3.bf16.msra.mxu1 %v2051_v60  ;;  %1938 = vmatprep.mubr.msk.bf16.mxu1 %vm2067_vm0, %v2066_v2  ;;  %v1193_v3 = vsel %vm606_vm8, %v1192_v0, 0.0  ;;  %v1202_v11 = vsel %vm609_vm10, %v1200_v9, 0.0  ;;  %v1810_v60 = vld [vmem:[%s2413_s10 + $0x1] ss:$0 sm:$0xff] }
 0x5ab   : > { %1942 = vmatprep.subr.bf16.mxu1 %v2066_v2  ;;  %v1195_v6 = vpack.c.bf16 %v1191_v1, %v1193_v3  ;;  %v1203_v12 = vpack.c.bf16 %v1202_v11, %v1199_v10 }
 0x5b5   : > { %1939 = vmatmul.mubr.msk.bf16.vlgmr.msra.gmra.mrb[16].mxu1 %vm683_vm6, %v1195_v6 }
 0x5b6   : > { %1943 = vmatpush3.bf16.msra.mxu1 %v2052_v5  ;;  %1944 = vmatprep.mubr.msk.bf16.mxu1 %vm2067_vm0, %v2066_v2 }
 0x5b7   : > { %1972 = vmatprep.subr.bf16.mxu1 %v2066_v2 }
 0x5c1   : > { %1945 = vmatmul.mubr.msk.bf16.vlgmr.msra.gmra.mrb[16].mxu1 %vm683_vm6, %v1203_v12 }
 0x5c2   : > { %1974 = vmatprep.mubr.msk.bf16.mxu1 %vm2067_vm0, %v2066_v2  ;;  %1973 = vmatpush3.bf16.msra.mxu1 %v2057_v52 }
 0x694   : > { %v1355_v15 = vpop.f32.mrb[16].mxu1 }
 0x695   : > { %v1986_v16 = vadd.f32 %v1783_v14, %v1355_v15  ;;  %v1946_v17 = vpop.f32.mrb[17].mxu1 }
 0x696   : > { %v1358_v18 = vpop.f32.mrb[18].mxu1 }
 0x697   : > { %v1987_v20 = vadd.f32 %v1783_v14, %v1358_v18  ;;  %v1947_v21 = vpop.f32.mrb[19].mxu1  ;;  %v1364_v22 = vmax.f32 %v1986_v16, 0.0 }
 0x699   : > { %v1365_v23 = vmax.f32 %v1987_v20, 0.0 }
 0x69b   : > { %v1366_v24 = vpack.c.bf16 %v1365_v23, %v1364_v22 }
 0x69d   : > { %1951 = vmatmul.mubr.msk.bf16.vlgmr.msra.gmra.mrb[8].mxu0 %vm683_vm6, %v1366_v24 }
 0x69e   : > { %1956 = vmatprep.mubr.msk.bf16.mxu0 %vm2067_vm0, %v2066_v2  ;;  %1955 = vmatpush3.bf16.msra.mxu0 %v2054_v25 }
 0x69f   : > { %1960 = vmatprep.subr.bf16.mxu0 %v2066_v2 }
 0x770   : > { %v1416_v27 = vpop.f32.mrb[8].mxu0 }
 0x771   : > { %v1417_v28 = vadd.f32 %v1790_v26, %v1416_v27  ;;  %v1952_v29 = vpop.f32.mrb[9].mxu0 }
 0x772   : > { %v1419_v30 = vpop.f32.mrb[10].mxu0 }
 0x773   : > { %v1423_v31 = vadd.f32 %v1417_v28, %v1161_v56  ;;  %v1420_v32 = vadd.f32 %v1790_v26, %v1419_v30  ;;  %v1953_v33 = vpop.f32.mrb[11].mxu0 }
 0x775   : > { %v1424_v34 = vadd.f32 %v1420_v32, %v1162_v57  ;;  %v1439_v35 = vmax.f32 %v1423_v31, 0.0 }
 0x777   : > { %v1440_v36 = vmax.f32 %v1424_v34, 0.0  ;;  %v1441_v40 = vrot.slane %v1439_v35, 7  ;;  %v1449_v47 = vrot.slane %v1439_v35, 1 }
 0x779   : > { %v1448_v38 = vpack.c.bf16 %v1440_v36, %v1439_v35  ;;  %v1442_v39 = vrot.slane %v1440_v36, 7  ;;  %v1450_v46 = vrot.slane %v1440_v36, 1 }
 0x77b   : > { %1957 = vmatmul.mubr.msk.bf16.vlgmr.msra.gmra.mrb[12].mxu0 %vm683_vm6, %v1448_v38  ;;  %v1444_v41 = vsel %vm474_vm2, %v1442_v39, %v1441_v40  ;;  %v1443_v42 = vsel %vm474_vm2, %v1441_v40, %v1442_v39  ;;  %v1452_v48 = vsel %vm542_vm4, %v1450_v46, %v1449_v47  ;;  %v1451_v49 = vsel %vm542_vm4, %v1449_v47, %v1450_v46 }
 0x77c   : > { %1961 = vmatpush3.bf16.msra.mxu0 %v2055_v37  ;;  %1962 = vmatprep.mubr.msk.bf16.mxu0 %vm2067_vm0, %v2066_v2  ;;  %v1445_v43 = vsel %vm470_vm3, %v1444_v41, 0.0  ;;  %v1454_v50 = vsel %vm539_vm5, %v1452_v48, 0.0 }
 0x77d   : > { %1966 = vmatprep.subr.bf16.mxu0 %v2066_v2  ;;  %v1447_v45 = vpack.c.bf16 %v1443_v42, %v1445_v43  ;;  %v1455_v51 = vpack.c.bf16 %v1454_v50, %v1451_v49 }
 0x787   : > { %1963 = vmatmul.mubr.msk.bf16.vlgmr.msra.gmra.mrb[12].mxu0 %vm683_vm6, %v1447_v45 }
 0x788   : > { %1967 = vmatpush3.bf16.msra.mxu0 %v2056_v44  ;;  %1968 = vmatprep.mubr.msk.bf16.mxu0 %vm2067_vm0, %v2066_v2  ;;  %v1803_v2 = vld [vmem:[%s2411_s8 + $0x1] ss:$0 sm:$0xff] }
 0x793   : > { %1969 = vmatmul.mubr.msk.bf16.vlgmr.msra.gmra.mrb[12].mxu0 %vm683_vm6, %v1455_v51 }
 0x866   : > { %v1607_v53 = vpop.f32.mrb[12].mxu0 }
 0x867   : > { %v1988_v54 = vadd.f32 %v1803_v2, %v1607_v53  ;;  %v1970_v4 = vpop.f32.mrb[13].mxu0 }
 0x868   : > { %v1610_v55 = vpop.f32.mrb[14].mxu0 }
 0x869   : > { %v1989_v56 = vadd.f32 %v1803_v2, %v1610_v55  ;;  %v1971_v19 = vpop.f32.mrb[15].mxu0  ;;  %v1616_v57 = vmax.f32 %v1988_v54, 0.0 }
 0x86b   : > { %v1617_v58 = vmax.f32 %v1989_v56, 0.0 }
 0x86d   : > { %v1618_v59 = vpack.c.bf16 %v1617_v58, %v1616_v57 }
 0x86f   : > { %1975 = vmatmul.mubr.msk.bf16.vlgmr.msra.gmra.mrb[20].mxu1 %vm683_vm6, %v1618_v59 }
 0x942   : > { %v1668_v61 = vpop.f32.mrb[20].mxu1 }
 0x943   : > { %v1669_v62 = vadd.f32 %v1810_v60, %v1668_v61  ;;  %v1976_v63 = vpop.f32.mrb[21].mxu1 }
 0x944   : > { %v1671_v0 = vpop.f32.mrb[22].mxu1 }
 0x945   : > { %v1675_v1 = vadd.f32 %v1669_v62, %v1423_v31  ;;  %v1672_v3 = vadd.f32 %v1810_v60, %v1671_v0  ;;  %v1977_v5 = vpop.f32.mrb[23].mxu1 }
 0x947   : > { %1677 = vst.msk [vmem:[%s386_s22] sm:$0xff] %vm683_vm6, %v1675_v1  ;;  %v1676_v6 = vadd.f32 %v1672_v3, %v1424_v34 }
 0x949   : > { %1678 = vst.msk [vmem:[%s386_s22 + $0x8] sm:$0xff] %vm683_vm6, %v1676_v6 }
 0x94a PF: > { %s21_s17 = sadd.s32 1, %s2064_s17  }
 0x94b   : > { %p18_p4 = scmp.ge.s32.totalorder %s21_s17, 4  }
 0x94d   :  { %20 = sbr.rel (!%p18_p4) target bundleno = 1 (0x1), region = 102 }

</bundles_post_ra>
